<compile_context>
chip_gen: v7x
topology: tpu7x:2x2x1
jax: 0.10.0
libtpu: 0.0.40
codegen_flags: <defaults>
</compile_context>

<pallas_src>
import jax
import jax.numpy as jnp
from jax.experimental import pallas as pl
from jax.experimental.pallas import tpu as pltpu

FEAT_DIM = 2048
BN_EPS = 1e-5
LANE = 128


# ----------------------------------------------------------------------------
# Kernels
# ----------------------------------------------------------------------------
def _make_feature_kernel(fuse_classifier):
    """pool(HW) -> project(C->2048) -> camera affine -> batch-stat BN
    [-> classifier matmul when fuse_classifier]."""

    def kernel(x_ref, wproj_ref, vec_ref, *rest):
        if fuse_classifier:
            clsw_ref, o_ref, acc_ref = rest
        else:
            o_ref, acc_ref = rest

        ci = pl.program_id(0)

        @pl.when(ci == 0)
        def _():
            acc_ref[...] = jnp.zeros_like(acc_ref)

        # x block is (N, HW, tc): C on the 128-lane axis (lane-dense loads);
        # the global-average-pool sum runs over the sublane axis with f32
        # accumulation, then the pooled (N, tc) slab is projected on the MXU
        # (bf16 operands, f32 accumulation).
        pooled = jnp.sum(x_ref[...].astype(jnp.float32), axis=1)          # (N, tc)
        acc_ref[...] += jnp.dot(pooled.astype(wproj_ref.dtype), wproj_ref[...],
                                preferred_element_type=jnp.float32)

        @pl.when(ci == pl.num_programs(0) - 1)
        def _():
            g_inv_hw = vec_ref[0:1, :]        # bb_gamma * (1/HW), pre-folded
            bb_beta = vec_ref[1:2, :]
            bn_gamma = vec_ref[2:3, :]
            bn_beta = vec_ref[3:4, :]
            # Finish the average pool + camera-specific backbone affine.
            feat = acc_ref[...] * g_inv_hw + bb_beta
            # CameraBNorm1d with using_running=False: batch statistics
            # (biased variance, like PyTorch BN at normalization time).
            mean = jnp.mean(feat, axis=0, keepdims=True)
            var = jnp.mean((feat - mean) ** 2, axis=0, keepdims=True)
            feat_bn = (feat - mean) * jax.lax.rsqrt(var + BN_EPS)
            feat_bn = feat_bn * bn_gamma + bn_beta
            if fuse_classifier:
                # classifier[k] (bias-free Linear); class dim padded to a
                # multiple of 128 -> lane-dense store.
                o_ref[...] = jnp.dot(feat_bn.astype(clsw_ref.dtype), clsw_ref[...],
                                     preferred_element_type=jnp.float32)
            else:
                o_ref[...] = feat_bn.astype(o_ref.dtype)

    return kernel


def _classifier_kernel(f_ref, w_ref, o_ref):
    # Plain tiled matmul over class tiles; features are already normalized.
    o_ref[...] = jnp.dot(f_ref[...], w_ref[...],
                         preferred_element_type=jnp.float32)


# ----------------------------------------------------------------------------
# Per-generation VMEM budgeting & tile selection
# ----------------------------------------------------------------------------
def _vmem_budget():
    """Returns (block_budget_bytes, vmem_limit_bytes)."""
    cap = 64 * 1024 * 1024                      # conservative default (v7x-sized)
    try:
        info = pltpu.get_tpu_info()
        cap = int(getattr(info, "vmem_capacity_bytes", cap))
    except Exception:
        pass
    if cap >= 128 * 1024 * 1024:                # v5e / v6e: 128 MiB physical
        return 56 * 1024 * 1024, 80 * 1024 * 1024
    return 24 * 1024 * 1024, 32 * 1024 * 1024   # v7x: 64 MiB physical per core


def _choose_c_tile(c, n, hw, budget):
    # Largest aligned C tile whose double-buffered x + w_proj blocks fit in a
    # fraction of the budget; irregular / small C uses one full-C block
    # (legal: block dim equals the full array dim), never a tiny tc=8 tile.
    candidates = [t for t in (1024, 512, 256, 128) if c % t == 0] or [c]
    for tc in candidates:
        blocks = 2 * (n * hw * tc * 2) + 2 * (tc * FEAT_DIM * 2)
        if blocks <= budget // 2:
            return tc
    return candidates[-1]


# ----------------------------------------------------------------------------
# Module forward
# ----------------------------------------------------------------------------
def ft_net_intra_specific_forward(params, x, k=0, using_running=False,
                                  force_two_phase=False):
    del using_running  # TODO(synk): running-stats BN path not implemented.
    n, c, h, w = x.shape
    hw = h * w

    # Backbone stand-in hands the kernel an NHWC bf16 feature map (single fused
    # XLA transpose+cast); halves the dominant HBM stream and makes C lane-dense.
    x_nhwc = jnp.transpose(x, (0, 2, 3, 1)).reshape(n, hw, c).astype(jnp.bfloat16)

    w_proj = params["w_proj"]                     # (C, 2048) bf16
    clsw = params["cls_w_t"][k]                   # (2048, ncls_pad) bf16, pre-transposed
    n_cls = params["num_classes"][k]
    ncls_pad = clsw.shape[1]

    inv_hw = 1.0 / float(hw)
    vec = jnp.stack([params["bb_gamma"][k] * inv_hw,   # fold 1/HW into camera gamma
                     params["bb_beta"][k],
                     params["bn_gamma"][k],
                     params["bn_beta"][k]], axis=0).astype(jnp.float32)   # (4, 2048)

    budget, vmem_limit = _vmem_budget()
    tc = _choose_c_tile(c, n, hw, budget)
    n_ct = c // tc if c % tc == 0 else 1
    n_pad = max(n, 8)

    # Can the full (lane-padded) classifier tile live in VMEM alongside the
    # feature-pass blocks?  If yes: single fused call, x read once, no class axis.
    fused_bytes = (2 * (n * hw * tc * 2)            # x blocks (bf16, double buffered)
                   + 2 * (tc * FEAT_DIM * 2)        # w_proj blocks
                   + 2 * (FEAT_DIM * ncls_pad * 2)  # classifier weight block
                   + 2 * (n_pad * ncls_pad * 4)     # f32 output block
                   + 8 * FEAT_DIM * 4               # (4,2048) affine vec (sublane pad)
                   + n_pad * FEAT_DIM * 4)          # f32 accumulator scratch
    use_fused = (not force_two_phase) and fused_bytes <= budget

    if use_fused:
        out_pad = pl.pallas_call(
            _make_feature_kernel(fuse_classifier=True),
            out_shape=jax.ShapeDtypeStruct((n, ncls_pad), jnp.float32),
            grid=(n_ct,),
            in_specs=[
                pl.BlockSpec((n, hw, tc), lambda ci: (0, 0, ci)),       # x (NHWC)
                pl.BlockSpec((tc, FEAT_DIM), lambda ci: (ci, 0)),       # w_proj
                pl.BlockSpec((4, FEAT_DIM), lambda ci: (0, 0)),         # affine vectors
                pl.BlockSpec((FEAT_DIM, ncls_pad), lambda ci: (0, 0)),  # classifier[k].W^T
            ],
            out_specs=pl.BlockSpec((n, ncls_pad), lambda ci: (0, 0)),
            scratch_shapes=[pltpu.VMEM((n, FEAT_DIM), jnp.float32)],
            compiler_params=pltpu.CompilerParams(
                dimension_semantics=("arbitrary",),      # pure reduction axis
                vmem_limit_bytes=vmem_limit),
        )(x_nhwc, w_proj, vec, clsw)
        return out_pad[:, :n_cls]

    # --- Fallback: two-phase structure (still reads x exactly once) ----------
    # Phase 1: feature + BN pass over C tiles -> (N, 2048) bf16.
    feat_bn = pl.pallas_call(
        _make_feature_kernel(fuse_classifier=False),
        out_shape=jax.ShapeDtypeStruct((n, FEAT_DIM), jnp.bfloat16),
        grid=(n_ct,),
        in_specs=[
            pl.BlockSpec((n, hw, tc), lambda ci: (0, 0, ci)),
            pl.BlockSpec((tc, FEAT_DIM), lambda ci: (ci, 0)),
            pl.BlockSpec((4, FEAT_DIM), lambda ci: (0, 0)),
        ],
        out_specs=pl.BlockSpec((n, FEAT_DIM), lambda ci: (0, 0)),
        scratch_shapes=[pltpu.VMEM((n, FEAT_DIM), jnp.float32)],
        compiler_params=pltpu.CompilerParams(
            dimension_semantics=("arbitrary",),
            vmem_limit_bytes=vmem_limit),
    )(x_nhwc, w_proj, vec)

    # Phase 2: classifier over class tiles; only the tiny (N,2048) bf16 feature
    # is re-read per tile (no x re-reads, no BN recompute).
    tn = next((t for t in (4096, 2048, 1024, 512, 256, 128)
               if ncls_pad % t == 0
               and (2 * FEAT_DIM * t * 2 + 2 * n_pad * t * 4
                    + 2 * n_pad * FEAT_DIM * 2) <= budget), 128)
    out_pad = pl.pallas_call(
        _classifier_kernel,
        out_shape=jax.ShapeDtypeStruct((n, ncls_pad), jnp.float32),
        grid=(ncls_pad // tn,),
        in_specs=[
            pl.BlockSpec((n, FEAT_DIM), lambda j: (0, 0)),
            pl.BlockSpec((FEAT_DIM, tn), lambda j: (0, j)),
        ],
        out_specs=pl.BlockSpec((n, tn), lambda j: (0, j)),
        compiler_params=pltpu.CompilerParams(
            dimension_semantics=("parallel",),           # real megacore split on v7x
            vmem_limit_bytes=vmem_limit),
    )(feat_bn, clsw)
    return out_pad[:, :n_cls]


# ----------------------------------------------------------------------------
# Deterministic parameter init (mirrors the module __init__ shapes / inits)
# ----------------------------------------------------------------------------
def init_params(key, in_channels, domain_number, num_classes_list):
    k_proj, k_cls = jax.random.split(key, 2)
    # Backbone stand-in projection (bf16 for the MXU fast path).
    w_proj = (0.02 * jax.random.normal(
        k_proj, (in_channels, FEAT_DIM), jnp.float32)).astype(jnp.bfloat16)

    # Per-domain classifiers: normal(std=0.001), no bias; stored pre-transposed
    # as (2048, pad128(num)) bf16 so the kernel output is lane-dense.
    cls_keys = jax.random.split(k_cls, len(num_classes_list))
    cls_w_t = []
    for kk, nc in zip(cls_keys, num_classes_list):
        wgt = 0.001 * jax.random.normal(kk, (nc, FEAT_DIM), jnp.float32)
        pad = (-nc) % LANE
        cls_w_t.append(jnp.pad(wgt, ((0, pad), (0, 0))).T.astype(jnp.bfloat16))

    return {
        # backbone stand-in camera-specific affine
        "w_proj": w_proj,
        "bb_gamma": jnp.ones((domain_number, FEAT_DIM), jnp.float32),
        "bb_beta": jnp.zeros((domain_number, FEAT_DIM), jnp.float32),
        # bn_neck: weight=1, bias=0 (bias frozen)
        "bn_gamma": jnp.ones((domain_number, FEAT_DIM), jnp.float32),
        "bn_beta": jnp.zeros((domain_number, FEAT_DIM), jnp.float32),
        # per-domain classifiers
        "cls_w_t": cls_w_t,
        "num_classes": list(num_classes_list),
    }


# ----------------------------------------------------------------------------
# Pure-JAX reference (same bf16 rounding points as the kernels)
# ----------------------------------------------------------------------------
def reference_forward(params, x, k):
    n, c, h, w = x.shape
    hw = h * w
    xb = x.astype(jnp.bfloat16).astype(jnp.float32)
    pooled = jnp.sum(xb.reshape(n, c, hw), axis=2)
    pooled = pooled.astype(jnp.bfloat16).astype(jnp.float32)
    feat = pooled @ params["w_proj"].astype(jnp.float32)
    feat = feat * (params["bb_gamma"][k] / float(hw)) + params["bb_beta"][k]
    mean = jnp.mean(feat, axis=0, keepdims=True)
    var = jnp.mean((feat - mean) ** 2, axis=0, keepdims=True)
    feat_bn = (feat - mean) * jax.lax.rsqrt(var + BN_EPS)
    feat_bn = feat_bn * params["bn_gamma"][k] + params["bn_beta"][k]
    feat_bn = feat_bn.astype(jnp.bfloat16).astype(jnp.float32)
    logits = feat_bn @ params["cls_w_t"][k].astype(jnp.float32)
    return logits[:, :params["num_classes"][k]]


if __name__ == "__main__":
    B, C, H, W = 2, 4, 16, 16
    domain_number = 3
    num_classes = [8, 10, 12]        # per-domain class counts (ModuleList)
    k = 1                            # camera / domain index for this forward

    key = jax.random.PRNGKey(0)
    kx, kp = jax.random.split(key, 2)

    x = jax.random.normal(kx, (B, C, H, W), jnp.float32)   # NCHW, like PyTorch
    params = init_params(kp, C, domain_number, num_classes)

    out_fused = ft_net_intra_specific_forward(params, x, k=k)          # fused path
    out_2ph = ft_net_intra_specific_forward(params, x, k=k,
                                            force_two_phase=True)      # fallback path
    jax.block_until_ready((out_fused, out_2ph))

    assert out_fused.shape == (B, num_classes[k]), out_fused.shape
    assert bool(jnp.all(jnp.isfinite(out_fused)))

    ref = reference_forward(params, x, k)
    assert jnp.allclose(out_fused, ref, atol=2e-3, rtol=2e-2), \
        float(jnp.max(jnp.abs(out_fused - ref)))
    assert jnp.allclose(out_fused, out_2ph, atol=1e-3, rtol=1e-2), \
        float(jnp.max(jnp.abs(out_fused - out_2ph)))

    print("KERNEL_OK")
</pallas_src>

<mosaic_0001>
module attributes {stable_mosaic.version = 11 : i64} {
  func.func @kernel(%arg0: i32, %arg1: memref<2x256x4xbf16, #tpu.memory_space<vmem>>, %arg2: memref<4x2048xbf16, #tpu.memory_space<vmem>>, %arg3: memref<4x2048xf32, #tpu.memory_space<vmem>>, %arg4: memref<2048x128xbf16, #tpu.memory_space<vmem>>, %arg5: memref<2x128xf32, #tpu.memory_space<vmem>>, %arg6: memref<2x2048xf32, #tpu.memory_space<vmem>>) attributes {dimension_semantics = [#tpu.dimension_semantics<arbitrary>], iteration_bounds = array<i64: 1>, scalar_prefetch = 0 : i64, scratch_operands = 1 : i64, tpu.core_type = #tpu.core_type<tc>, window_params = [{transform_indices = @transform_0, window_bounds = array<i64: 2, 256, 4>}, {transform_indices = @transform_1, window_bounds = array<i64: 4, 2048>}, {pipeline_mode = #tpu.pipeline_mode<synchronous>, transform_indices = @transform_2, window_bounds = array<i64: 4, 2048>}, {pipeline_mode = #tpu.pipeline_mode<synchronous>, transform_indices = @transform_3, window_bounds = array<i64: 2048, 128>}, {pipeline_mode = #tpu.pipeline_mode<synchronous>, transform_indices = @transform_4, window_bounds = array<i64: 2, 128>}]} {
    %c0_i32 = arith.constant 0 : i32
    %0 = arith.cmpi eq, %arg0, %c0_i32 : i32
    %1 = arith.extui %0 : i1 to i32
    %c0_i32_0 = arith.constant 0 : i32
    %2 = arith.cmpi ne, %1, %c0_i32_0 : i32
    scf.if %2 {
      %cst_12 = arith.constant 0.000000e+00 : f32
      %15 = vector.broadcast %cst_12 : f32 to vector<2x2048xf32>
      %c0_13 = arith.constant 0 : index
      %c0_14 = arith.constant 0 : index
      %16 = vector.load %arg6[%c0_13, %c0_14] : memref<2x2048xf32, #tpu.memory_space<vmem>>, vector<2x2048xf32>
      tpu.vector_store %arg6[%c0_13, %c0_14], %15 {strides = array<i32>} : memref<2x2048xf32, #tpu.memory_space<vmem>>, vector<2x2048xf32>,
    } else {
    }
    %c0 = arith.constant 0 : index
    %c0_1 = arith.constant 0 : index
    %c0_2 = arith.constant 0 : index
    %3 = vector.load %arg1[%c0, %c0_1, %c0_2] : memref<2x256x4xbf16, #tpu.memory_space<vmem>>, vector<2x256x4xbf16>
    %4 = arith.extf %3 : vector<2x256x4xbf16> to vector<2x256x4xf32>
    %cst = arith.constant dense<0.000000e+00> : vector<2x4xf32>
    %5 = vector.multi_reduction <add>, %4, %cst [1] : vector<2x256x4xf32> to vector<2x4xf32>
    %c0_3 = arith.constant 0 : index
    %c0_4 = arith.constant 0 : index
    %6 = vector.load %arg6[%c0_3, %c0_4] : memref<2x2048xf32, #tpu.memory_space<vmem>>, vector<2x2048xf32>
    %7 = arith.truncf %5 : vector<2x4xf32> to vector<2x4xbf16>
    %c0_5 = arith.constant 0 : index
    %c0_6 = arith.constant 0 : index
    %8 = vector.load %arg2[%c0_5, %c0_6] : memref<4x2048xbf16, #tpu.memory_space<vmem>>, vector<4x2048xbf16>
    %cst_7 = arith.constant dense<0.000000e+00> : vector<2x2048xf32>
    %9 = tpu.matmul %7, %8, %cst_7 {dimension_numbers = #tpu.dot_dimension_numbers<[1], [0], [0], [1], [0, 0, 1, 1], [], []>} : vector<2x4xbf16>, vector<4x2048xbf16>, vector<2x2048xf32> -> vector<2x2048xf32>
    %10 = arith.addf %6, %9 : vector<2x2048xf32>
    %c0_8 = arith.constant 0 : index
    %c0_9 = arith.constant 0 : index
    %11 = vector.load %arg6[%c0_8, %c0_9] : memref<2x2048xf32, #tpu.memory_space<vmem>>, vector<2x2048xf32>
    tpu.vector_store %arg6[%c0_8, %c0_9], %10 {strides = array<i32>} : memref<2x2048xf32, #tpu.memory_space<vmem>>, vector<2x2048xf32>,
    %c0_i32_10 = arith.constant 0 : i32
    %12 = arith.cmpi eq, %arg0, %c0_i32_10 : i32
    %13 = arith.extui %12 : i1 to i32
    %c0_i32_11 = arith.constant 0 : i32
    %14 = arith.cmpi ne, %13, %c0_i32_11 : i32
    scf.if %14 {
      %c0_12 = arith.constant 0 : index
      %c0_13 = arith.constant 0 : index
      %15 = vector.load %arg3[%c0_12, %c0_13] : memref<4x2048xf32, #tpu.memory_space<vmem>>, vector<1x2048xf32>
      %c1 = arith.constant 1 : index
      %c0_14 = arith.constant 0 : index
      %16 = vector.load %arg3[%c1, %c0_14] : memref<4x2048xf32, #tpu.memory_space<vmem>>, vector<1x2048xf32>
      %c2 = arith.constant 2 : index
      %c0_15 = arith.constant 0 : index
      %17 = vector.load %arg3[%c2, %c0_15] : memref<4x2048xf32, #tpu.memory_space<vmem>>, vector<1x2048xf32>
      %c3 = arith.constant 3 : index
      %c0_16 = arith.constant 0 : index
      %18 = vector.load %arg3[%c3, %c0_16] : memref<4x2048xf32, #tpu.memory_space<vmem>>, vector<1x2048xf32>
      %c0_17 = arith.constant 0 : index
      %c0_18 = arith.constant 0 : index
      %19 = vector.load %arg6[%c0_17, %c0_18] : memref<2x2048xf32, #tpu.memory_space<vmem>>, vector<2x2048xf32>
      %20 = vector.broadcast %15 : vector<1x2048xf32> to vector<2x2048xf32>
      %21 = arith.mulf %19, %20 : vector<2x2048xf32>
      %22 = vector.broadcast %16 : vector<1x2048xf32> to vector<2x2048xf32>
      %23 = arith.addf %21, %22 : vector<2x2048xf32>
      %cst_19 = arith.constant dense<0.000000e+00> : vector<2048xf32>
      %24 = vector.multi_reduction <add>, %23, %cst_19 [0] : vector<2x2048xf32> to vector<2048xf32>
      %25 = vector.shape_cast %24 : vector<2048xf32> to vector<1x2048xf32>
      %cst_20 = arith.constant 2.000000e+00 : f32
      %26 = vector.broadcast %cst_20 : f32 to vector<1x2048xf32>
      %27 = arith.divf %25, %26 : vector<1x2048xf32>
      %28 = vector.broadcast %27 : vector<1x2048xf32> to vector<2x2048xf32>
      %29 = arith.subf %23, %28 : vector<2x2048xf32>
      %30 = arith.mulf %29, %29 : vector<2x2048xf32>
      %cst_21 = arith.constant dense<0.000000e+00> : vector<2048xf32>
      %31 = vector.multi_reduction <add>, %30, %cst_21 [0] : vector<2x2048xf32> to vector<2048xf32>
      %32 = vector.shape_cast %31 : vector<2048xf32> to vector<1x2048xf32>
      %cst_22 = arith.constant 2.000000e+00 : f32
      %33 = vector.broadcast %cst_22 : f32 to vector<1x2048xf32>
      %34 = arith.divf %32, %33 : vector<1x2048xf32>
      %35 = vector.broadcast %27 : vector<1x2048xf32> to vector<2x2048xf32>
      %36 = arith.subf %23, %35 : vector<2x2048xf32>
      %cst_23 = arith.constant 9.99999974E-6 : f32
      %37 = vector.broadcast %cst_23 : f32 to vector<1x2048xf32>
      %38 = arith.addf %34, %37 : vector<1x2048xf32>
      %39 = math.rsqrt %38 : vector<1x2048xf32>
      %40 = vector.broadcast %39 : vector<1x2048xf32> to vector<2x2048xf32>
      %41 = arith.mulf %36, %40 : vector<2x2048xf32>
      %42 = vector.broadcast %17 : vector<1x2048xf32> to vector<2x2048xf32>
      %43 = arith.mulf %41, %42 : vector<2x2048xf32>
      %44 = vector.broadcast %18 : vector<1x2048xf32> to vector<2x2048xf32>
      %45 = arith.addf %43, %44 : vector<2x2048xf32>
      %46 = arith.truncf %45 : vector<2x2048xf32> to vector<2x2048xbf16>
      %c0_24 = arith.constant 0 : index
      %c0_25 = arith.constant 0 : index
      %47 = vector.load %arg4[%c0_24, %c0_25] : memref<2048x128xbf16, #tpu.memory_space<vmem>>, vector<2048x128xbf16>
      %cst_26 = arith.constant dense<0.000000e+00> : vector<2x128xf32>
      %48 = tpu.matmul %46, %47, %cst_26 {dimension_numbers = #tpu.dot_dimension_numbers<[1], [0], [0], [1], [0, 0, 1, 1], [], []>} : vector<2x2048xbf16>, vector<2048x128xbf16>, vector<2x128xf32> -> vector<2x128xf32>
      %c0_27 = arith.constant 0 : index
      %c0_28 = arith.constant 0 : index
      %49 = vector.load %arg5[%c0_27, %c0_28] : memref<2x128xf32, #tpu.memory_space<vmem>>, vector<2x128xf32>
      tpu.vector_store %arg5[%c0_27, %c0_28], %48 {strides = array<i32>} : memref<2x128xf32, #tpu.memory_space<vmem>>, vector<2x128xf32>,
    } else {
    }
    return
  }
  func.func @transform_0(%arg0: i32) -> (i32, i32, i32) {
    %c0_i32 = arith.constant 0 : i32
    %c0_i32_0 = arith.constant 0 : i32
    %c0_i32_1 = arith.constant 0 : i32
    return %c0_i32, %c0_i32_0, %arg0 : i32, i32, i32
  }
  func.func @transform_1(%arg0: i32) -> (i32, i32) {
    %c0_i32 = arith.constant 0 : i32
    %c0_i32_0 = arith.constant 0 : i32
    return %arg0, %c0_i32 : i32, i32
  }
  func.func @transform_2(%arg0: i32) -> (i32, i32) {
    %c0_i32 = arith.constant 0 : i32
    %c0_i32_0 = arith.constant 0 : i32
    %c0_i32_1 = arith.constant 0 : i32
    return %c0_i32, %c0_i32_0 : i32, i32
  }
  func.func @transform_3(%arg0: i32) -> (i32, i32) {
    %c0_i32 = arith.constant 0 : i32
    %c0_i32_0 = arith.constant 0 : i32
    %c0_i32_1 = arith.constant 0 : i32
    return %c0_i32, %c0_i32_0 : i32, i32
  }
  func.func @transform_4(%arg0: i32) -> (i32, i32) {
    %c0_i32 = arith.constant 0 : i32
    %c0_i32_0 = arith.constant 0 : i32
    %c0_i32_1 = arith.constant 0 : i32
    return %c0_i32, %c0_i32_0 : i32, i32
  }
}

</mosaic_0001>

<bundles_post_ra>
// kernel: tpu_custom_call.1
= control target key start
LH: loop header
LB: loop body
LE: loop exit
PB: predicated region body
PF: predicated region fallthrough
CT: control target
= control target key end

     0   :  { %9 = vsyncpa [#allocation4], 0  ;;  %s5344_s0 = inlined_call_operand.vmem [shape: bf16[2,256,4], index: 0, kind: input, shape index: {}]   ;;  %s5345_s1 = inlined_call_operand.vmem [shape: bf16[4,2048], index: 1, kind: input, shape index: {}]   ;;  %s5346_s2 = inlined_call_operand.vmem [shape: f32[4,2048], index: 2, kind: input, shape index: {}]   ;;  %s5347_s3 = inlined_call_operand.hbm [shape: bf16[2048,128], index: 3, kind: input, shape index: {}]   ;;  %s5348_s4 = inlined_call_operand.hbm [shape: f32[2,128], index: 4, kind: output, shape index: {}]  }
   0x1   :  { %10 = vsyncpa [#allocation5], 0  ;;  %s4284_s15 = smov [#allocation3]   ;;  %s4236_s19 = scalar_lea.hbm %s5347_s3, 16384 }
   0x2   :  { %s22_s16 = sshll.u32 %s4284_s15, 4  ;;  %p4237_p0 = scmp.ne.s32.totalorder %s5347_s3, %s4236_s19  ;;  %s23_s16 = int_to_ptr.vmem [resolvable:$true] %s22_s16 }
   0x3   :  { %p4240_p1 = scmp.lt.u32.totalorder %s4236_s19, %s5347_s3 }
   0x5   :  { %p4242_p2 = pnand %p4240_p1, %p4237_p0 }
   0x7   :  { %4245 = shalt.err (!%p4242_p2)
}
   0x8   :  { %s4246_s24 = scalar_lea.vmem %s23_s16, 16384  ;;  %p4251_p4 = scmp.lt.s32.totalorder %s23_s16, %s23_s16 }
   0x9   :  { %p4247_p3 = scmp.ne.s32.totalorder %s23_s16, %s4246_s24  ;;  %p4252_p5 = scmp.lt.s32.totalorder %s4246_s24, %s4246_s24 }
   0xb   :  { %p4253_p6 = por %p4252_p5, %p4251_p4 }
   0xd   :  { %p4254_p7 = pnand %p4253_p6, %p4247_p3 }
   0xf   :  { %4257 = shalt.err (!%p4254_p7)
}
  0x10   :  { %s4285_s25 = smov 64   ;;  %s4286_s26 = smov 4  }
  0x11   :  { %28 = dma.hbm_to_vmem [thread:$0]  %s5347_s3, 16384, %s23_s16, [#allocation4], %s4285_s25, %s4285_s25, %s4286_s26  }
  0x12   :  { %4280 = dma.done.wait [#allocation4], 16384  }
  0x13   :  { %4281 = vsyncadd [#allocation4], 4294950912  ;;  %v333_v0 = vlaneseq  ;;  %v4287_v1 = vmov 1983009808   ;;  %v5349_v3 = vmov 0   ;;  %v314_v7 = vld [vmem:[%s5345_s1] sm:$0xff] }
  0x14   :  { %v331_v2 = vunpack.c.l.s4 %v4287_v1  ;;  %481 = vmatprep.mubr.bf16.mxu0 %v5349_v3  ;;  %522 = vmatprep.mubr.bf16.mxu1 %v5349_v3  ;;  %vm400_vm0 = vcmask 1041408   ;;  %v329_v9 = vcombine.high %v314_v7, %v314_v7  ;;  %v4343_v13 = vld [vmem:[%s5344_s0] sm:$0xff]   ;;  %v4350_v16 = vld [vmem:[%s5344_s0 + $0x8] sm:$0xff]   ;;  %v4355_v17 = vld [vmem:[%s5344_s0 + $0x10] sm:$0xff]   ;;  %vm169_vm1 = vcmask 31744  }
  0x15   :  { %v4329_v4 = vshrl.u32 %v333_v0, 7  ;;  %v4360_v18 = vld [vmem:[%s5344_s0 + $0x18] sm:$0xff]   ;;  %v4365_v19 = vld [vmem:[%s5344_s0 + $0x20] sm:$0xff]   ;;  %v3733_v20 = vunpack.c.l.bf16 %v4343_v13  ;;  %v4372_v21 = vld [vmem:[%s5344_s0 + $0x28] sm:$0xff]   ;;  %v3734_v23 = vunpack.c.h.bf16 %v4343_v13  ;;  %v3737_v24 = vunpack.c.l.bf16 %v4350_v16 }
  0x16   :  { %v332_v5 = vunpack.c.0.s8 %v331_v2  ;;  %v4377_v22 = vld [vmem:[%s5344_s0 + $0x30] sm:$0xff]   ;;  %v3738_v25 = vunpack.c.h.bf16 %v4350_v16  ;;  %v3741_v26 = vunpack.c.l.bf16 %v4355_v17  ;;  %v4386_v27 = vld [vmem:[%s5344_s0 + $0x38] sm:$0xff]   ;;  %v4391_v28 = vld [vmem:[%s5344_s0 + $0x40] sm:$0xff]   ;;  %v3742_v30 = vunpack.c.h.bf16 %v4355_v17 }
  0x17   :  { %v4396_v29 = vld [vmem:[%s5344_s0 + $0x48] sm:$0xff]   ;;  %v3745_v31 = vunpack.c.l.bf16 %v4360_v18  ;;  %v3746_v32 = vunpack.c.h.bf16 %v4360_v18  ;;  %v3749_v33 = vunpack.c.l.bf16 %v4365_v19  ;;  %v4405_v34 = vld [vmem:[%s5344_s0 + $0x50] sm:$0xff]   ;;  %v4410_v35 = vld [vmem:[%s5344_s0 + $0x58] sm:$0xff]   ;;  %v3750_v37 = vunpack.c.h.bf16 %v4365_v19 }
  0x18   :  { %v4332_v6 = vsub.s32 %v332_v5, %v4329_v4  ;;  %v4415_v36 = vld [vmem:[%s5344_s0 + $0x60] sm:$0xff]   ;;  %v3753_v38 = vunpack.c.l.bf16 %v4372_v21  ;;  %v3754_v39 = vunpack.c.h.bf16 %v4372_v21  ;;  %v3757_v40 = vunpack.c.l.bf16 %v4377_v22  ;;  %v4424_v41 = vld [vmem:[%s5344_s0 + $0x68] sm:$0xff]   ;;  %v4429_v42 = vld [vmem:[%s5344_s0 + $0x70] sm:$0xff]  }
  0x19   :  { %v4434_v43 = vld [vmem:[%s5344_s0 + $0x78] sm:$0xff]   ;;  %v3758_v44 = vunpack.c.h.bf16 %v4377_v22  ;;  %v3761_v45 = vunpack.c.l.bf16 %v4386_v27  ;;  %v3762_v46 = vunpack.c.h.bf16 %v4386_v27  ;;  %v3765_v47 = vunpack.c.l.bf16 %v4391_v28  ;;  %v4443_v48 = vld [vmem:[%s5344_s0 + $0x80] sm:$0xff]   ;;  %v4448_v49 = vld [vmem:[%s5344_s0 + $0x88] sm:$0xff]  }
  0x1a   :  { %v336_v8 = vrot.slane %v314_v7, %v4332_v6  ;;  %v343_v11 = vrot.slane %v329_v9, %v4332_v6  ;;  %v4453_v50 = vld [vmem:[%s5344_s0 + $0x90] sm:$0xff]   ;;  %v3766_v51 = vunpack.c.h.bf16 %v4391_v28  ;;  %v3769_v52 = vunpack.c.l.bf16 %v4396_v29  ;;  %v4462_v55 = vld [vmem:[%s5344_s0 + $0x98] sm:$0xff]   ;;  %v4467_v56 = vld [vmem:[%s5344_s0 + $0xa0] sm:$0xff]  }
  0x1b   :  { %v3770_v53 = vunpack.c.h.bf16 %v4396_v29  ;;  %v3773_v54 = vunpack.c.l.bf16 %v4405_v34  ;;  %v3774_v57 = vunpack.c.h.bf16 %v4405_v34  ;;  %v4476_v61 = vld [vmem:[%s5344_s0 + $0xa8] sm:$0xff]   ;;  %v4485_v2 = vld [vmem:[%s5344_s0 + $0xb0] sm:$0xff]   ;;  %v3797_v9 = vunpack.c.l.bf16 %v4443_v48  ;;  %v4544_v3 = vld [vmem:[%s5344_s0 + $0xe0] sm:$0xff]  }
  0x1c   :  { %v344_v10 = vcombine.high %v336_v8, %v336_v8  ;;  %v402_v12 = vsel %vm400_vm0, %v336_v8, 0  ;;  %v345_v14 = vcombine.high %v343_v11, %v343_v11  ;;  %v408_v15 = vsel %vm400_vm0, %v343_v11, 0  ;;  %v4499_v11 = vld [vmem:[%s5344_s0 + $0xc0] sm:$0xff]   ;;  %v4525_v0 = vld [vmem:[%s5344_s0 + $0xd0] sm:$0xff]  }
  0x1d   :  { %v170_v8 = vsel %vm169_vm1, %v3733_v20, 0.0  ;;  %v171_v63 = vsel %vm169_vm1, %v3734_v23, 0.0  ;;  %v173_v20 = vsel %vm169_vm1, %v3737_v24, 0.0  ;;  %v3830_v13 = vunpack.c.h.bf16 %v4499_v11 }
  0x1e   :  { %3580 = vmatprep.subr.msk.bf16.mxu0 %vm400_vm0, %v344_v10  ;;  %3582 = vmatprep.subr.msk.bf16.mxu1 %vm400_vm0, %v345_v14  ;;  %v4494_v10 = vld [vmem:[%s5344_s0 + $0xb8] sm:$0xff]   ;;  %v3801_v14 = vunpack.c.l.bf16 %v4448_v49  ;;  %v172_v62 = vadd.f32 %v171_v63, %v170_v8  ;;  %v175_v24 = vsel %vm169_vm1, %v3738_v25, 0.0  ;;  %v3837_v7 = vunpack.c.l.bf16 %v4525_v0 }
  0x1f   :  { %450 = vmatpush1.bf16.msra.mxu0 %v402_v12  ;;  %491 = vmatpush1.bf16.msra.mxu1 %v408_v15  ;;  %v3798_v12 = vunpack.c.h.bf16 %v4443_v48  ;;  %v3802_v15 = vunpack.c.h.bf16 %v4448_v49  ;;  %v4515_v49 = vld [vmem:[%s5344_s0 + $0xc8] sm:$0xff]   ;;  %v4530_v48 = vld [vmem:[%s5344_s0 + $0xd8] sm:$0xff]   ;;  %v3845_v63 = vunpack.c.l.bf16 %v4544_v3  ;;  %v177_v8 = vsel %vm169_vm1, %v3741_v26, 0.0 }
  0x20   :  { %v3833_v23 = vunpack.c.l.bf16 %v4515_v49  ;;  %v3834_v60 = vunpack.c.h.bf16 %v4515_v49  ;;  %v3841_v5 = vunpack.c.l.bf16 %v4530_v48  ;;  %v174_v59 = vadd.f32 %v173_v20, %v172_v62 }
  0x21   :  { %v3842_v58 = vunpack.c.h.bf16 %v4530_v48  ;;  %v179_v16 = vsel %vm169_vm1, %v3742_v30, 0.0  ;;  %v181_v1 = vsel %vm169_vm1, %v3745_v31, 0.0  ;;  %v183_v62 = vsel %vm169_vm1, %v3746_v32, 0.0 }
  0x22   :  { %v176_v25 = vadd.f32 %v175_v24, %v174_v59  ;;  %v185_v20 = vsel %vm169_vm1, %v3749_v33, 0.0  ;;  %v187_v26 = vsel %vm169_vm1, %v3750_v37, 0.0  ;;  %v189_v17 = vsel %vm169_vm1, %v3753_v38, 0.0 }
  0x23   :  { %v191_v30 = vsel %vm169_vm1, %v3754_v39, 0.0  ;;  %v4584_v18 = vsel %vm169_vm1, %v3757_v40, 0.0  ;;  %v4589_v19 = vsel %vm169_vm1, %v3758_v44, 0.0  ;;  %v4594_v32 = vsel %vm169_vm1, %v3761_v45, 0.0 }
  0x24   :  { %v178_v31 = vadd.f32 %v177_v8, %v176_v25  ;;  %v4599_v21 = vsel %vm169_vm1, %v3762_v46, 0.0  ;;  %v4604_v33 = vsel %vm169_vm1, %v3765_v47, 0.0  ;;  %v4609_v22 = vsel %vm169_vm1, %v3766_v51, 0.0 }
  0x25   :  { %v4614_v37 = vsel %vm169_vm1, %v3769_v52, 0.0  ;;  %v239_v27 = vsel %vm169_vm1, %v3797_v9, 0.0  ;;  %v4620_v39 = vsel %vm169_vm1, %v3770_v53, 0.0  ;;  %v240_v40 = vsel %vm169_vm1, %v3798_v12, 0.0 }
  0x26   :  { %v180_v38 = vadd.f32 %v179_v16, %v178_v31  ;;  %v242_v28 = vsel %vm169_vm1, %v3801_v14, 0.0  ;;  %v4627_v44 = vsel %vm169_vm1, %v3773_v54, 0.0  ;;  %v4632_v45 = vsel %vm169_vm1, %v3774_v57, 0.0 }
  0x27   :  { %v5351_v46 = vunpack.c.l.bf16 %v4410_v35  ;;  %v241_v47 = vadd.f32 %v240_v40, %v239_v27  ;;  %v5352_v52 = vunpack.c.h.bf16 %v4410_v35  ;;  %v5353_v54 = vunpack.c.l.bf16 %v4415_v36 }
  0x28   :  { %v182_v51 = vadd.f32 %v181_v1, %v180_v38  ;;  %v244_v34 = vsel %vm169_vm1, %v3802_v15, 0.0  ;;  %v5354_v57 = vunpack.c.h.bf16 %v4415_v36  ;;  %v5355_v12 = vunpack.c.l.bf16 %v4424_v41 }
  0x29   :  { %v4637_v29 = vsel %vm169_vm1, %v5351_v46, 0.0  ;;  %v4642_v53 = vsel %vm169_vm1, %v5352_v52, 0.0  ;;  %v4647_v59 = vsel %vm169_vm1, %v5353_v54, 0.0  ;;  %v5356_v35 = vunpack.c.h.bf16 %v4424_v41 }
  0x2a   :  { %v4653_v9 = vsel %vm169_vm1, %v5354_v57, 0.0  ;;  %v4658_v1 = vsel %vm169_vm1, %v5355_v12, 0.0  ;;  %v243_v24 = vadd.f32 %v242_v28, %v241_v47  ;;  %v184_v8 = vadd.f32 %v183_v62, %v182_v51 }
  0x2b   :  { %v4663_v14 = vsel %vm169_vm1, %v5356_v35, 0.0  ;;  %v5357_v16 = vunpack.c.l.bf16 %v4429_v42  ;;  %v5358_v36 = vunpack.c.h.bf16 %v4429_v42  ;;  %v5359_v31 = vunpack.c.l.bf16 %v4453_v50 }
  0x2c   :  { %v5360_v41 = vunpack.c.l.bf16 %v4434_v43  ;;  %v5361_v62 = vunpack.c.h.bf16 %v4434_v43  ;;  %v245_v28 = vadd.f32 %v244_v34, %v243_v24  ;;  %v5362_v42 = vunpack.c.h.bf16 %v4453_v50 }
  0x2d   :  { %v4668_v15 = vsel %vm169_vm1, %v5357_v16, 0.0  ;;  %v4673_v25 = vsel %vm169_vm1, %v5358_v36, 0.0  ;;  %v246_v27 = vsel %vm169_vm1, %v5359_v31, 0.0  ;;  %v186_v47 = vadd.f32 %v185_v20, %v184_v8  ;;  %v3887_v36 = vld [vmem:[%s5344_s0 + $0xe8] sm:$0xff]  }
  0x2e   :  { %v4681_v38 = vsel %vm169_vm1, %v5360_v41, 0.0  ;;  %v4686_v40 = vsel %vm169_vm1, %v5361_v62, 0.0  ;;  %v248_v46 = vsel %vm169_vm1, %v5362_v42, 0.0  ;;  %v5363_v51 = vunpack.c.l.bf16 %v4462_v55 }
  0x2f   :  { %v5364_v54 = vunpack.c.h.bf16 %v4462_v55  ;;  %v5365_v12 = vunpack.c.l.bf16 %v4467_v56  ;;  %v247_v35 = vadd.f32 %v246_v27, %v245_v28  ;;  %v5366_v34 = vunpack.c.h.bf16 %v4467_v56  ;;  %v315_v55 = vld [vmem:[%s5345_s1 + $0x8] sm:$0xff] }
  0x30   :  { %v250_v52 = vsel %vm169_vm1, %v5363_v51, 0.0  ;;  %v5367_v24 = vunpack.c.l.bf16 %v4476_v61  ;;  %v5368_v8 = vunpack.c.h.bf16 %v4476_v61  ;;  %v188_v31 = vadd.f32 %v187_v26, %v186_v47 }
  0x31   :  { %v252_v57 = vsel %vm169_vm1, %v5364_v54, 0.0  ;;  %v254_v43 = vsel %vm169_vm1, %v5365_v12, 0.0  ;;  %v256_v50 = vsel %vm169_vm1, %v5366_v34, 0.0  ;;  %v5369_v56 = vunpack.c.l.bf16 %v4485_v2 }
  0x32   :  { %v258_v20 = vsel %vm169_vm1, %v5367_v24, 0.0  ;;  %v260_v16 = vsel %vm169_vm1, %v5368_v8, 0.0  ;;  %v5370_v41 = vunpack.c.h.bf16 %v4485_v2  ;;  %v5371_v61 = vunpack.c.l.bf16 %v4494_v10  ;;  %v3888_v2 = vld [vmem:[%s5344_s0 + $0xf0] sm:$0xff]  }
  0x33   :  { %v262_v27 = vsel %vm169_vm1, %v5369_v56, 0.0  ;;  %v249_v42 = vadd.f32 %v248_v46, %v247_v35  ;;  %v5372_v51 = vunpack.c.h.bf16 %v4494_v10  ;;  %v5373_v12 = vunpack.c.l.bf16 %v4499_v11 }
  0x34   :  { %v264_v62 = vsel %vm169_vm1, %v5370_v41, 0.0  ;;  %v266_v28 = vsel %vm169_vm1, %v5371_v61, 0.0  ;;  %v272_v47 = vsel %vm169_vm1, %v3830_v13, 0.0  ;;  %v190_v34 = vadd.f32 %v189_v17, %v188_v31 }
  0x35   :  { %v268_v54 = vsel %vm169_vm1, %v5372_v51, 0.0  ;;  %v270_v26 = vsel %vm169_vm1, %v5373_v12, 0.0  ;;  %v274_v46 = vsel %vm169_vm1, %v3833_v23, 0.0  ;;  %v4740_v10 = vrot.slane %v315_v55, %v4332_v6 }
  0x36   :  { %v346_v35 = vcombine.high %v315_v55, %v315_v55  ;;  %v3846_v24 = vunpack.c.h.bf16 %v4544_v3  ;;  %v3849_v8 = vunpack.c.l.bf16 %v3887_v36  ;;  %v3850_v56 = vunpack.c.h.bf16 %v3887_v36 }
  0x37   :  { %v251_v11 = vadd.f32 %v250_v52, %v249_v42  ;;  %v192_v41 = vadd.f32 %v191_v30, %v190_v34  ;;  %v276_v13 = vsel %vm169_vm1, %v3834_v60, 0.0  ;;  %v361_v17 = vcombine.high %v4740_v10, %v4740_v10 }
  0x38   :  { %v4749_v31 = vrot.slane %v346_v35, %v4332_v6  ;;  %v3853_v23 = vunpack.c.l.bf16 %v3888_v2  ;;  %v278_v55 = vsel %vm169_vm1, %v3837_v7, 0.0  ;;  %v5374_v36 = vunpack.c.h.bf16 %v4525_v0 }
  0x39   :  { %v253_v61 = vadd.f32 %v252_v57, %v251_v11  ;;  %v194_v49 = vadd.f32 %v4584_v18, %v192_v41  ;;  %v282_v60 = vsel %vm169_vm1, %v3841_v5, 0.0  ;;  %v284_v52 = vsel %vm169_vm1, %v3842_v58, 0.0  ;;  %3584 = vmatprep.subr.msk.bf16.mxu0 %vm400_vm0, %v361_v17 }
  0x3a   :  { %v280_v30 = vsel %vm169_vm1, %v5374_v36, 0.0  ;;  %v362_v57 = vcombine.high %v4749_v31, %v4749_v31  ;;  %v3854_v7 = vunpack.c.h.bf16 %v3888_v2  ;;  %v286_v0 = vsel %vm169_vm1, %v3845_v63, 0.0 }
  0x3b   :  { %v255_v42 = vadd.f32 %v254_v43, %v253_v61  ;;  %v288_v18 = vsel %vm169_vm1, %v3846_v24, 0.0  ;;  %v196_v51 = vadd.f32 %v4589_v19, %v194_v49  ;;  %v290_v5 = vsel %vm169_vm1, %v3849_v8, 0.0 }
  0x3c   :  { %v292_v48 = vsel %vm169_vm1, %v3850_v56, 0.0  ;;  %3586 = vmatprep.subr.msk.bf16.mxu1 %vm400_vm0, %v362_v57  ;;  %v294_v43 = vsel %vm169_vm1, %v3853_v23, 0.0  ;;  %v296_v3 = vsel %vm169_vm1, %v3854_v7, 0.0  ;;  %vm322_vm2 = vcmask 1041409  }
  0x3d   :  { %v257_v58 = vadd.f32 %v256_v50, %v255_v42  ;;  %v198_v12 = vadd.f32 %v4594_v32, %v196_v51 }
  0x3f   :  { %v259_v34 = vadd.f32 %v258_v20, %v257_v58  ;;  %v200_v63 = vadd.f32 %v4599_v21, %v198_v12 }
  0x41   :  { %v261_v2 = vadd.f32 %v260_v16, %v259_v34  ;;  %v202_v35 = vadd.f32 %v4604_v33, %v200_v63  ;;  %v420_v34 = vsel %vm400_vm0, %v4749_v31, 0  ;;  %v5375_v31 = vmov 0  }
  0x43   :  { %v263_v19 = vadd.f32 %v262_v27, %v261_v2  ;;  %v204_v24 = vadd.f32 %v4609_v22, %v202_v35  ;;  %v317_v35 = vld [vmem:[%s5345_s1 + $0x18] sm:$0xff] }
  0x45   :  { %v265_v8 = vadd.f32 %v264_v62, %v263_v19  ;;  %v206_v56 = vadd.f32 %v4614_v37, %v204_v24 }
  0x47   :  { %v267_v11 = vadd.f32 %v266_v28, %v265_v8  ;;  %v208_v50 = vadd.f32 %v4620_v39, %v206_v56 }
  0x49   :  { %v269_v32 = vadd.f32 %v268_v54, %v267_v11  ;;  %v210_v20 = vadd.f32 %v4627_v44, %v208_v50 }
  0x4b   :  { %v271_v41 = vadd.f32 %v270_v26, %v269_v32  ;;  %v212_v17 = vadd.f32 %v4632_v45, %v210_v20  ;;  %v3889_v45 = vld [vmem:[%s5344_s0 + $0xf8] sm:$0xff]   ;;  %v380_v32 = vcombine.high %v317_v35, %v317_v35  ;;  %v387_v20 = vrot.slane %v317_v35, %v4332_v6 }
  0x4d   :  { %v273_v23 = vadd.f32 %v272_v47, %v271_v41  ;;  %v214_v21 = vadd.f32 %v4637_v29, %v212_v17  ;;  %v394_v41 = vrot.slane %v380_v32, %v4332_v6 }
  0x4f   :  { %v275_v16 = vadd.f32 %v274_v46, %v273_v23  ;;  %v216_v33 = vadd.f32 %v4642_v53, %v214_v21  ;;  %v3857_v46 = vunpack.c.l.bf16 %v3889_v45  ;;  %v395_v21 = vcombine.high %v387_v20, %v387_v20 }
  0x51   :  { %v277_v27 = vadd.f32 %v276_v13, %v275_v16  ;;  %v218_v22 = vadd.f32 %v4647_v59, %v216_v33  ;;  %v298_v36 = vsel %vm169_vm1, %v3857_v46, 0.0  ;;  %v396_v16 = vcombine.high %v394_v41, %v394_v41  ;;  %v4083_v46 = vld [vmem:[#allocation3 + $0x88] sm:$0xff]  }
  0x52   :  { %v438_v33 = vsel %vm400_vm0, %v387_v20, 0  ;;  %v4095_v20 = vld [vmem:[#allocation3 + $0xa0] sm:$0xff]  }
  0x53   :  { %v279_v62 = vadd.f32 %v278_v55, %v277_v27  ;;  %v220_v37 = vadd.f32 %v4653_v9, %v218_v22  ;;  %v3858_v55 = vunpack.c.h.bf16 %v3889_v45  ;;  %v444_v27 = vsel %vm400_vm0, %v394_v41, 0  ;;  %v4076_v22 = vld [vmem:[#allocation3 + $0x40] sm:$0xff]  }
  0x54   :  { %v4843_v45 = vsub.s32 2, %v4329_v4 }
  0x55   :  { %v281_v28 = vadd.f32 %v280_v30, %v279_v62  ;;  %v222_v39 = vadd.f32 %v4658_v1, %v220_v37  ;;  %v4077_v62 = vld [vmem:[#allocation3] sm:$0xff]  }
  0x56   :  { %v4078_v37 = vld [vmem:[#allocation3 + $0xc0] sm:$0xff]  }
  0x57   :  { %v283_v54 = vadd.f32 %v282_v60, %v281_v28  ;;  %v224_v44 = vadd.f32 %v4663_v14, %v222_v39  ;;  %v4079_v28 = vld [vmem:[#allocation3 + $0x80] sm:$0xff]   ;;  %v4080_v39 = vld [vmem:[#allocation3 + $0x48] sm:$0xff]  }
  0x59   :  { %v285_v29 = vadd.f32 %v284_v52, %v283_v54  ;;  %v226_v26 = vadd.f32 %v4668_v15, %v224_v44  ;;  %v300_v15 = vsel %vm169_vm1, %v3858_v55, 0.0  ;;  %v4837_v54 = vsub.s32 0, %v4329_v4 }
  0x5a   :  { %v4840_v44 = vsub.s32 1, %v4329_v4 }
  0x5b   :  { %v287_v53 = vadd.f32 %v286_v0, %v285_v29  ;;  %v228_v47 = vadd.f32 %v4673_v25, %v226_v26  ;;  %v4846_v29 = vsub.s32 3, %v4329_v4  ;;  %v4081_v26 = vld [vmem:[#allocation3 + $0x8] sm:$0xff]  }
  0x5d   :  { %v289_v59 = vadd.f32 %v288_v18, %v287_v53  ;;  %v230_v9 = vadd.f32 %v4681_v38, %v228_v47  ;;  %v876_v53 = vld [vmem:[%s5346_s2] ss:$4 sm:$0xff] }
  0x5e   :  { %v4082_v47 = vld [vmem:[#allocation3 + $0xc8] sm:$0xff]   ;;  %v912_v55 = vrot.slane %v876_v53, %v4846_v29 }
  0x5f   :  { %v291_v13 = vadd.f32 %v290_v5, %v289_v59  ;;  %v232_v1 = vadd.f32 %v4686_v40, %v230_v9  ;;  %v414_v40 = vsel %vm400_vm0, %v4740_v10, 0  ;;  %v316_v5 = vld [vmem:[%s5345_s1 + $0x10] sm:$0xff] }
  0x60   :  { %v370_v19 = vrot.slane %v316_v5, %v4332_v6  ;;  %v3597_v59 = vld [vmem:[%s5346_s2 + $0x1] ss:$4 sm:$0xff] }
  0x61   :  { %v293_v61 = vadd.f32 %v292_v48, %v291_v13  ;;  %v233_v14 = vrot.slane %v232_v1, 4  ;;  %v4084_v9 = vld [vmem:[#allocation3 + $0x50] sm:$0xff]   ;;  %v900_v13 = vrot.slane %v876_v53, %v4837_v54 }
  0x62   :  { %v378_v11 = vcombine.high %v370_v19, %v370_v19  ;;  %v426_v17 = vsel %vm400_vm0, %v370_v19, 0  ;;  %v4093_v19 = vld [vmem:[#allocation3 + $0x20] sm:$0xff]  }
  0x63   :  { %v295_v30 = vadd.f32 %v294_v43, %v293_v61  ;;  %v234_v49 = vadd.f32 %v233_v14, %v232_v1  ;;  %v904_v1 = vrot.slane %v876_v53, %v4840_v44  ;;  %v908_v61 = vrot.slane %v876_v53, %v4843_v45  ;;  %v4085_v14 = vld [vmem:[#allocation3 + $0x10] sm:$0xff]  }
  0x65   :  { %v297_v60 = vadd.f32 %v296_v3, %v295_v30  ;;  %v235_v52 = vrot.slane %v234_v49, 2  ;;  %v363_v3 = vcombine.high %v316_v5, %v316_v5  ;;  %v1046_v30 = vrot.slane %v3597_v59, %v4840_v44 }
  0x67   :  { %v299_v57 = vadd.f32 %v298_v36, %v297_v60  ;;  %v236_v25 = vadd.f32 %v235_v52, %v234_v49  ;;  %v377_v24 = vrot.slane %v363_v3, %v4332_v6  ;;  %v1042_v36 = vrot.slane %v3597_v59, %v4837_v54  ;;  %v4086_v52 = vld [vmem:[#allocation3 + $0xd0] sm:$0xff]  }
  0x68   :  { %v1050_v49 = vrot.slane %v3597_v59, %v4843_v45  ;;  %v1054_v60 = vrot.slane %v3597_v59, %v4846_v29 }
  0x69   :  { %v301_v7 = vadd.f32 %v300_v15, %v299_v57  ;;  %v237_v42 = vrot.slane %v236_v25, 1  ;;  %v379_v50 = vcombine.high %v377_v24, %v377_v24  ;;  %v432_v23 = vsel %vm400_vm0, %v377_v24, 0  ;;  %v4885_v24 = vld [vmem:[%s5346_s2 + $0x20] ss:$4 sm:$0xff] }
  0x6a   :  { %v4863_v15 = vsub.s32 4, %v4329_v4  ;;  %v4866_v57 = vsub.s32 5, %v4329_v4  ;;  %v1104_v5 = vcombine.low %v1050_v49, %v1054_v60 }
  0x6b   :  { %v302_v0 = vrot.slane %v301_v7, 4  ;;  %v238_v18 = vadd.f32 %v237_v42, %v236_v25  ;;  %v4869_v25 = vsub.s32 6, %v4329_v4  ;;  %v4087_v42 = vld [vmem:[#allocation3 + $0x90] sm:$0xff]  }
  0x6c   :  { %v1058_v3 = vrot.slane %v3597_v59, %v4863_v15  ;;  %v1118_v32 = vrot.slane %v1104_v5, %v4332_v6 }
  0x6d   :  { %v303_v38 = vadd.f32 %v302_v0, %v301_v7  ;;  %v312_v12 = vpack.c.bf16 %v238_v18, %v238_v18  ;;  %v4872_v7 = vsub.s32 7, %v4329_v4  ;;  %v4088_v0 = vld [vmem:[#allocation3 + $0x58] sm:$0xff]   ;;  %v961_v18 = vcombine.low %v900_v13, %v904_v1 }
  0x6e   :  { %v956_v49 = vrot.slane %v4885_v24, %v4869_v25 }
  0x6f   :  { %v304_v51 = vrot.slane %v303_v38, 2  ;;  %v320_v2 = vunpack.c.l.b16 %v312_v12  ;;  %v920_v12 = vrot.slane %v876_v53, %v4866_v57  ;;  %v928_v4 = vrot.slane %v876_v53, %v4872_v7 }
  0x70   :  { %v1070_v35 = vrot.slane %v3597_v59, %v4872_v7  ;;  %v960_v60 = vrot.slane %v4885_v24, %v4872_v7 }
  0x71   :  { %v305_v48 = vadd.f32 %v304_v51, %v303_v38  ;;  %v4089_v38 = vld [vmem:[#allocation3 + $0x18] sm:$0xff]   ;;  %v962_v51 = vcombine.low %v908_v61, %v912_v55 }
  0x73   :  { %v306_v58 = vrot.slane %v305_v48, 1 }
  0x75   :  { %v307_v43 = vadd.f32 %v306_v58, %v305_v48  ;;  %v4090_v48 = vld [vmem:[#allocation3 + $0xd8] sm:$0xff]   ;;  %v916_v58 = vrot.slane %v876_v53, %v4863_v15 }
  0x77   :  { %v313_v63 = vpack.c.bf16 %v307_v43, %v307_v43  ;;  %v4091_v43 = vld [vmem:[#allocation3 + $0x98] sm:$0xff]   ;;  %v4896_v41 = vcombine.low %v916_v58, %v920_v12 }
  0x79   :  { %v321_v10 = vunpack.c.l.b16 %v313_v63  ;;  %v1062_v63 = vrot.slane %v3597_v59, %v4866_v57  ;;  %v986_v13 = vrot.slane %v4896_v41, %v4332_v6 }
  0x7b   :  { %v323_v8 = vsel %vm322_vm2, %v321_v10, %v320_v2  ;;  %v1066_v2 = vrot.slane %v3597_v59, %v4869_v25  ;;  %v4092_v10 = vld [vmem:[#allocation3 + $0x60] sm:$0xff]  }
  0x7c   :  { %v324_v56 = vpack.c.b16 %v323_v8, %v323_v8  ;;  %v4094_v8 = vld [vmem:[#allocation3 + $0xe0] sm:$0xff]  }
  0x7e   :  { %3581 = vmatmul.mubr.msk.bf16.vlgmr.msra.gmra.mrb[0].mxu0 %vm169_vm1, %v324_v56  ;;  %3583 = vmatmul.mubr.msk.bf16.vlgmr.msra.gmra.mrb[0].mxu1 %vm169_vm1, %v324_v56 }
  0x7f   :  { %532 = vmatpush1.bf16.msra.mxu0 %v414_v40  ;;  %573 = vmatpush1.bf16.msra.mxu1 %v420_v34  ;;  %v1103_v40 = vcombine.low %v1042_v36, %v1046_v30  ;;  %v924_v34 = vrot.slane %v876_v53, %v4869_v25  ;;  %v948_v36 = vrot.slane %v4885_v24, %v4863_v15 }
  0x80   :  { %563 = vmatprep.mubr.bf16.mxu0 %v5375_v31  ;;  %604 = vmatprep.mubr.bf16.mxu1 %v5375_v31  ;;  %v952_v30 = vrot.slane %v4885_v24, %v4866_v57 }
  0x81   :  { %3588 = vmatprep.subr.msk.bf16.mxu0 %vm400_vm0, %v378_v11  ;;  %3590 = vmatprep.subr.msk.bf16.mxu1 %vm400_vm0, %v379_v50  ;;  %v976_v11 = vrot.slane %v962_v51, %v4332_v6  ;;  %v1111_v50 = vrot.slane %v1103_v40, %v4332_v6  ;;  %v4102_v40 = vld [vmem:[#allocation3 + $0xf0] sm:$0xff]  }
  0x86   :  { %3585 = vmatmul.mubr.msk.bf16.vlgmr.msra.gmra.mrb[4].mxu0 %vm169_vm1, %v324_v56  ;;  %3587 = vmatmul.mubr.msk.bf16.vlgmr.msra.gmra.mrb[4].mxu1 %vm169_vm1, %v324_v56 }
  0x87   :  { %614 = vmatpush1.bf16.msra.mxu0 %v426_v17  ;;  %655 = vmatpush1.bf16.msra.mxu1 %v432_v23  ;;  %v4898_v17 = vcombine.low %v924_v34, %v928_v4  ;;  %v4900_v23 = vcombine.low %v1058_v3, %v1062_v63  ;;  %v4964_v3 = vld [vmem:[%s5346_s2 + $0x3] ss:$4 sm:$0xff] }
  0x88   :  { %645 = vmatprep.mubr.bf16.mxu0 %v5375_v31  ;;  %686 = vmatprep.mubr.bf16.mxu1 %v5375_v31 }
  0x89   :  { %3592 = vmatprep.subr.msk.bf16.mxu0 %vm400_vm0, %v395_v21  ;;  %3594 = vmatprep.subr.msk.bf16.mxu1 %vm400_vm0, %v396_v16  ;;  %v4902_v21 = vcombine.low %v1066_v2, %v1070_v35  ;;  %v4096_v16 = vld [vmem:[#allocation3 + $0x68] sm:$0xff]   ;;  %v993_v1 = vrot.slane %v4898_v17, %v4332_v6  ;;  %v1128_v61 = vrot.slane %v4900_v23, %v4332_v6  ;;  %v4104_v35 = vld [vmem:[#allocation3 + $0x78] sm:$0xff]  }
  0x8b   :  { %v1135_v55 = vrot.slane %v4902_v21, %v4332_v6 }
  0x8e   :  { %3589 = vmatmul.mubr.msk.bf16.vlgmr.msra.gmra.mrb[8].mxu0 %vm169_vm1, %v324_v56  ;;  %3591 = vmatmul.mubr.msk.bf16.vlgmr.msra.gmra.mrb[8].mxu1 %vm169_vm1, %v324_v56 }
  0x8f   :  { %696 = vmatpush1.bf16.msra.mxu0 %v438_v33  ;;  %737 = vmatpush1.bf16.msra.mxu1 %v444_v27  ;;  %v932_v33 = vrot.slane %v4885_v24, %v4837_v54  ;;  %v936_v27 = vrot.slane %v4885_v24, %v4840_v44 }
  0x90   :  { %727 = vmatprep.mubr.bf16.mxu0 %v5375_v31  ;;  %768 = vmatprep.mubr.bf16.mxu1 %v5375_v31  ;;  %v4894_v31 = vld [vmem:[%s5346_s2 + $0x21] ss:$4 sm:$0xff] }
  0x91   :  { %3890 = vmatprep.subr.bf16.mxu0 %v4076_v22  ;;  %3912 = vmatprep.subr.bf16.mxu1 %v4078_v37  ;;  %v940_v22 = vrot.slane %v4885_v24, %v4843_v45  ;;  %v4097_v37 = vld [vmem:[#allocation3 + $0x28] sm:$0xff]   ;;  %v1086_v53 = vrot.slane %v4894_v31, %v4846_v29  ;;  %v1090_v58 = vrot.slane %v4894_v31, %v4863_v15 }
  0x92   :  { %v1094_v12 = vrot.slane %v4894_v31, %v4866_v57  ;;  %v1098_v34 = vrot.slane %v4894_v31, %v4869_v25  ;;  %v1102_v4 = vrot.slane %v4894_v31, %v4872_v7 }
  0x96   :  { %3593 = vmatmul.mubr.msk.bf16.vlgmr.msra.gmra.mrb[12].mxu0 %vm169_vm1, %v324_v56  ;;  %3595 = vmatmul.mubr.msk.bf16.vlgmr.msra.gmra.mrb[12].mxu1 %vm169_vm1, %v324_v56  ;;  %v969_v56 = vrot.slane %v961_v18, %v4332_v6 }
  0x97   :  { %3891 = vmatpush3.bf16.msra.mxu0 %v4077_v62  ;;  %3913 = vmatpush3.bf16.msra.mxu1 %v4079_v28  ;;  %v944_v62 = vrot.slane %v4885_v24, %v4846_v29  ;;  %v1074_v28 = vrot.slane %v4894_v31, %v4837_v54 }
  0x98   :  { %3892 = vmatprep.subr.bf16.mxu0 %v4080_v39  ;;  %3914 = vmatprep.subr.bf16.mxu1 %v4082_v47  ;;  %v1078_v39 = vrot.slane %v4894_v31, %v4840_v44  ;;  %v4098_v47 = vld [vmem:[#allocation3 + $0xe8] sm:$0xff]   ;;  %v4920_v59 = vcombine.low %v969_v56, %v976_v11 }
  0x9a   :  { %v4949_v18 = vcombine.low %v1074_v28, %v1078_v39  ;;  %v1983_v28 = vrot.slane %v4964_v3, %v4840_v44  ;;  %v1987_v39 = vrot.slane %v4964_v3, %v4843_v45 }
  0x9b   :  { %3893 = vmatpush3.bf16.msra.mxu0 %v4081_v26  ;;  %3915 = vmatpush3.bf16.msra.mxu1 %v4083_v46  ;;  %v1082_v26 = vrot.slane %v4894_v31, %v4843_v45  ;;  %v4922_v46 = vcombine.low %v1111_v50, %v1118_v32  ;;  %v1012_v31 = vcombine.low %v948_v36, %v952_v30 }
  0x9c   :  { %3894 = vmatprep.subr.bf16.mxu0 %v4084_v9  ;;  %3916 = vmatprep.subr.bf16.mxu1 %v4086_v52  ;;  %v4099_v9 = vld [vmem:[#allocation3 + $0xa8] sm:$0xff]   ;;  %v4101_v52 = vld [vmem:[#allocation3 + $0x30] sm:$0xff]   ;;  %v1154_v30 = vcombine.low %v1090_v58, %v1094_v12 }
  0x9d   :  { %v4951_v51 = vcombine.low %v1082_v26, %v1086_v53  ;;  %v1991_v26 = vrot.slane %v4964_v3, %v4846_v29  ;;  %v4108_v53 = vld [vmem:[#allocation3 + $0x140] sm:$0xff]  }
  0x9f   :  { %3895 = vmatpush3.bf16.msra.mxu0 %v4085_v14  ;;  %3917 = vmatpush3.bf16.msra.mxu1 %v4087_v42  ;;  %v4100_v14 = vld [vmem:[#allocation3 + $0x70] sm:$0xff]   ;;  %v2041_v12 = vcombine.low %v1987_v39, %v1991_v26 }
  0xa0   :  { %3896 = vmatprep.subr.bf16.mxu0 %v4088_v0  ;;  %3918 = vmatprep.subr.bf16.mxu1 %v4090_v48  ;;  %v4943_v42 = vld [vmem:[%s5346_s2 + $0x2] ss:$4 sm:$0xff]  ;;  %v4945_v0 = vcombine.low %v932_v33, %v936_v27 }
  0xa1   :  { %v1845_v24 = vrot.slane %v4943_v42, %v4843_v45  ;;  %v4106_v33 = vld [vmem:[#allocation3 + $0xf8] sm:$0xff]  }
  0xa2   :  { %v4107_v27 = vld [vmem:[#allocation3 + $0xb8] sm:$0xff]   ;;  %v1003_v36 = vrot.slane %v4945_v0, %v4332_v6  ;;  %v1020_v0 = vrot.slane %v1012_v31, %v4332_v6 }
  0xa3   :  { %3897 = vmatpush3.bf16.msra.mxu0 %v4089_v38  ;;  %3919 = vmatpush3.bf16.msra.mxu1 %v4091_v43  ;;  %v4947_v38 = vcombine.low %v940_v22, %v944_v62  ;;  %v4103_v43 = vld [vmem:[#allocation3 + $0xb0] sm:$0xff]  }
  0xa4   :  { %3898 = vmatprep.subr.bf16.mxu0 %v4092_v10  ;;  %3920 = vmatprep.subr.bf16.mxu1 %v4094_v8  ;;  %v1837_v10 = vrot.slane %v4943_v42, %v4837_v54  ;;  %v1849_v8 = vrot.slane %v4943_v42, %v4846_v29 }
  0xa7   :  { %3899 = vmatpush3.bf16.msra.mxu0 %v4093_v19  ;;  %3921 = vmatpush3.bf16.msra.mxu1 %v4095_v20  ;;  %v1841_v19 = vrot.slane %v4943_v42, %v4840_v44  ;;  %v1013_v20 = vcombine.low %v956_v49, %v960_v60  ;;  %v1155_v49 = vcombine.low %v1098_v34, %v1102_v4 }
  0xa8   :  { %3900 = vmatprep.subr.bf16.mxu0 %v4096_v16  ;;  %3922 = vmatprep.subr.bf16.mxu1 %v4098_v47  ;;  %v4105_v16 = vld [vmem:[#allocation3 + $0x38] sm:$0xff]   ;;  %v4110_v47 = vld [vmem:[#allocation3 + $0x1c0] sm:$0xff]  }
  0xa9   :  { %v1898_v60 = vcombine.low %v1837_v10, %v1841_v19  ;;  %v1169_v10 = vrot.slane %v1155_v49, %v4332_v6 }
  0xab   :  { %3901 = vmatpush3.bf16.msra.mxu0 %v4097_v37  ;;  %3923 = vmatpush3.bf16.msra.mxu1 %v4099_v9  ;;  %v1979_v37 = vrot.slane %v4964_v3, %v4837_v54  ;;  %v1906_v19 = vrot.slane %v1898_v60, %v4332_v6 }
  0xac   :  { %3902 = vmatprep.subr.bf16.mxu0 %v4100_v14  ;;  %3924 = vmatprep.subr.bf16.mxu1 %v4102_v40 }
  0xad   :  { %v2040_v58 = vcombine.low %v1979_v37, %v1983_v28 }
  0xaf   :  { %3903 = vmatpush3.bf16.msra.mxu0 %v4101_v52  ;;  %3925 = vmatpush3.bf16.msra.mxu1 %v4103_v43  ;;  %v1899_v52 = vcombine.low %v1845_v24, %v1849_v8  ;;  %v1152_v43 = vrot.slane %v4951_v51, %v4332_v6 }
  0xb0   :  { %3904 = vmatprep.subr.bf16.mxu0 %v4104_v35  ;;  %3926 = vmatprep.subr.bf16.mxu1 %v4106_v33 }
  0xb1   :  { %v1913_v17 = vrot.slane %v1899_v52, %v4332_v6 }
  0xb3   :  { %3905 = vmatpush3.bf16.msra.mxu0 %v4105_v16  ;;  %3927 = vmatpush3.bf16.msra.mxu1 %v4107_v27  ;;  %v5030_v33 = vcombine.low %v1906_v19, %v1913_v17  ;;  %v1853_v27 = vrot.slane %v4943_v42, %v4863_v15 }
  0xb4   :  { %3934 = vmatprep.subr.bf16.mxu0 %v4108_v53  ;;  %3956 = vmatprep.subr.bf16.mxu1 %v4110_v47  ;;  %v1861_v47 = vrot.slane %v4943_v42, %v4869_v25 }
 0x151   :  { %v483_v5 = vpop.f32.mrb[0].mxu0  ;;  %v524_v48 = vpop.f32.mrb[0].mxu1 }
 0x152   :  { %v485_v63 = vpop.f32.mrb[1].mxu0  ;;  %v526_v2 = vpop.f32.mrb[1].mxu1 }
 0x153   :  { %v793_v56 = vcombine.low %v483_v5, %v485_v63  ;;  %v794_v11 = vcombine.low %v524_v48, %v526_v2  ;;  %v487_v50 = vpop.f32.mrb[2].mxu0  ;;  %v528_v32 = vpop.f32.mrb[2].mxu1  ;;  %v1010_v5 = vrot.slane %v4947_v38, %v4332_v6  ;;  %v1145_v48 = vrot.slane %v4949_v18, %v4332_v6 }
 0x154   :  { %v488_v22 = vpop.f32.mrb[3].mxu0  ;;  %v529_v62 = vpop.f32.mrb[3].mxu1  ;;  %v1027_v63 = vrot.slane %v1013_v20, %v4332_v6  ;;  %v994_v38 = vcombine.low %v986_v13, %v993_v1  ;;  %v1136_v18 = vcombine.low %v1128_v61, %v1135_v55  ;;  %v2055_v50 = vrot.slane %v2041_v12, %v4332_v6 }
 0x155   :  { %v801_v9 = vrot.slane %v793_v56, %v4332_v6  ;;  %v808_v14 = vrot.slane %v794_v11, %v4332_v6  ;;  %v5014_v8 = vcombine.low %v1003_v36, %v1010_v5  ;;  %v5016_v55 = vcombine.low %v1145_v48, %v1152_v43 }
 0x156   :  { %v5018_v56 = vcombine.low %v1020_v0, %v1027_v63  ;;  %v2048_v11 = vrot.slane %v2040_v58, %v4332_v6  ;;  %v1857_v22 = vrot.slane %v4943_v42, %v4866_v57 }
 0x157   :  { %v809_v40 = vcombine.low %v801_v9, %v808_v14  ;;  %v1865_v9 = vrot.slane %v4943_v42, %v4872_v7 }
 0x158   :  { %v5038_v53 = vcombine.low %v2048_v11, %v2055_v50  ;;  %v5046_v63 = vcombine.low %v1853_v27, %v1857_v22 }
 0x159   :  { %v1033_v34 = vmul.f32 %v4920_v59, %v809_v40  ;;  %v565_v4 = vpop.f32.mrb[4].mxu0  ;;  %v606_v2 = vpop.f32.mrb[4].mxu1  ;;  %v1162_v59 = vrot.slane %v1154_v30, %v4332_v6 }
 0x15a   :  { %v567_v51 = vpop.f32.mrb[5].mxu0  ;;  %v608_v35 = vpop.f32.mrb[5].mxu1 }
 0x15b   :  { %v5012_v41 = vadd.f32 %v4922_v46, %v1033_v34  ;;  %v810_v13 = vcombine.low %v565_v4, %v567_v51  ;;  %v811_v1 = vcombine.low %v606_v2, %v608_v35  ;;  %v569_v21 = vpop.f32.mrb[6].mxu0  ;;  %v610_v24 = vpop.f32.mrb[6].mxu1  ;;  %v5028_v16 = vcombine.low %v1162_v59, %v1169_v10 }
 0x15c   :  { %v570_v23 = vpop.f32.mrb[7].mxu0  ;;  %v611_v61 = vpop.f32.mrb[7].mxu1 }
 0x15d   :  { %v1183_v46 = vcombine.high %v5012_v41, %v5012_v41  ;;  %v1190_v32 = vrot.slane %v5012_v41, %v4332_v6  ;;  %v818_v31 = vrot.slane %v810_v13, %v4332_v6  ;;  %v825_v20 = vrot.slane %v811_v1, %v4332_v6 }
 0x15f   :  { %v1197_v62 = vrot.slane %v1183_v46, %v4332_v6  ;;  %v1198_v37 = vcombine.high %v1190_v32, %v1190_v32  ;;  %v1267_v28 = vsel %vm400_vm0, %v1190_v32, 0.0  ;;  %v826_v39 = vcombine.low %v818_v31, %v825_v20 }
 0x160   :  { %v1268_v26 = vrot.slane %v1267_v28, 4 }
 0x161   :  { %v1199_v14 = vcombine.high %v1197_v62, %v1197_v62  ;;  %v1274_v36 = vsel %vm400_vm0, %v1198_v37, 0.0  ;;  %v1281_v30 = vsel %vm400_vm0, %v1197_v62, 0.0  ;;  %v1034_v49 = vmul.f32 %v994_v38, %v826_v39  ;;  %v647_v60 = vpop.f32.mrb[8].mxu0  ;;  %v688_v52 = vpop.f32.mrb[8].mxu1 }
 0x162   :  { %v1269_v40 = vadd.f32 %v1268_v26, %v1267_v28  ;;  %v1275_v5 = vrot.slane %v1274_v36, 4  ;;  %v1282_v48 = vrot.slane %v1281_v30, 4  ;;  %v649_v43 = vpop.f32.mrb[9].mxu0  ;;  %v690_v0 = vpop.f32.mrb[9].mxu1 }
 0x163   :  { %v1288_v58 = vsel %vm400_vm0, %v1199_v14, 0.0  ;;  %v5049_v12 = vadd.f32 %v1136_v18, %v1034_v49  ;;  %v827_v34 = vcombine.low %v647_v60, %v649_v43  ;;  %v828_v4 = vcombine.low %v688_v52, %v690_v0  ;;  %v651_v2 = vpop.f32.mrb[10].mxu0  ;;  %v692_v51 = vpop.f32.mrb[10].mxu1 }
 0x164   :  { %v1270_v35 = vrot.slane %v1269_v40, 2  ;;  %v1276_v59 = vadd.f32 %v1275_v5, %v1274_v36  ;;  %v1283_v38 = vadd.f32 %v1282_v48, %v1281_v30  ;;  %v1289_v10 = vrot.slane %v1288_v58, 4  ;;  %v652_v19 = vpop.f32.mrb[11].mxu0  ;;  %v693_v17 = vpop.f32.mrb[11].mxu1 }
 0x165   :  { %v1200_v13 = vcombine.high %v5049_v12, %v5049_v12  ;;  %v1207_v1 = vrot.slane %v5049_v12, %v4332_v6  ;;  %v835_v21 = vrot.slane %v827_v34, %v4332_v6  ;;  %v842_v18 = vrot.slane %v828_v4, %v4332_v6 }
 0x166   :  { %v1271_v24 = vadd.f32 %v1270_v35, %v1269_v40  ;;  %v1277_v23 = vrot.slane %v1276_v59, 2  ;;  %v1284_v61 = vrot.slane %v1283_v38, 2  ;;  %v1290_v11 = vadd.f32 %v1289_v10, %v1288_v58 }
 0x167   :  { %v1214_v50 = vrot.slane %v1200_v13, %v4332_v6  ;;  %v1215_v46 = vcombine.high %v1207_v1, %v1207_v1  ;;  %v1295_v32 = vsel %vm400_vm0, %v1207_v1, 0.0  ;;  %v843_v31 = vcombine.low %v835_v21, %v842_v18 }
 0x168   :  { %v1272_v20 = vrot.slane %v1271_v24, 1  ;;  %v1278_v27 = vadd.f32 %v1277_v23, %v1276_v59  ;;  %v1285_v22 = vadd.f32 %v1284_v61, %v1283_v38  ;;  %v1291_v62 = vrot.slane %v1290_v11, 2 }
 0x169   :  { %v1216_v37 = vcombine.high %v1214_v50, %v1214_v50  ;;  %v1296_v28 = vrot.slane %v1295_v32, 4  ;;  %v1302_v39 = vsel %vm400_vm0, %v1215_v46, 0.0  ;;  %v1309_v26 = vsel %vm400_vm0, %v1214_v50, 0.0  ;;  %v5061_v14 = vpop.f32.mrb[12].mxu0  ;;  %v5063_v36 = vpop.f32.mrb[12].mxu1 }
 0x16a   :  { %v1273_v30 = vadd.f32 %v1272_v20, %v1271_v24  ;;  %v1279_v49 = vrot.slane %v1278_v27, 1  ;;  %v1286_v60 = vrot.slane %v1285_v22, 1  ;;  %v1292_v52 = vadd.f32 %v1291_v62, %v1290_v11  ;;  %v5065_v40 = vpop.f32.mrb[13].mxu0  ;;  %v5067_v5 = vpop.f32.mrb[13].mxu1 }
 0x16b   :  { %v1297_v48 = vadd.f32 %v1296_v28, %v1295_v32  ;;  %v1303_v43 = vrot.slane %v1302_v39, 4  ;;  %v1310_v0 = vrot.slane %v1309_v26, 4  ;;  %v1316_v58 = vsel %vm400_vm0, %v1216_v37, 0.0  ;;  %v733_v34 = vpop.f32.mrb[14].mxu0  ;;  %v774_v4 = vpop.f32.mrb[14].mxu1 }
 0x16c   :  { %v1280_v2 = vadd.f32 %v1279_v49, %v1278_v27  ;;  %v1287_v51 = vadd.f32 %v1286_v60, %v1285_v22  ;;  %v1293_v35 = vrot.slane %v1292_v52, 1  ;;  %v1380_v59 = vmul.f32 0.5, %v1273_v30  ;;  %v734_v38 = vpop.f32.mrb[15].mxu0  ;;  %v775_v10 = vpop.f32.mrb[15].mxu1 }
 0x16d   :  { %v1298_v19 = vrot.slane %v1297_v48, 2  ;;  %v1304_v17 = vadd.f32 %v1303_v43, %v1302_v39  ;;  %v1311_v13 = vadd.f32 %v1310_v0, %v1309_v26  ;;  %v1317_v1 = vrot.slane %v1316_v58, 4 }
 0x16e   :  { %v1294_v21 = vadd.f32 %v1293_v35, %v1292_v52  ;;  %v1381_v18 = vmul.f32 0.5, %v1280_v2  ;;  %v1382_v24 = vmul.f32 0.5, %v1287_v51  ;;  %v1035_v23 = vmul.f32 %v5014_v8, %v843_v31 }
 0x16f   :  { %v1299_v61 = vadd.f32 %v1298_v19, %v1297_v48  ;;  %v1305_v11 = vrot.slane %v1304_v17, 2  ;;  %v1312_v50 = vrot.slane %v1311_v13, 2  ;;  %v1318_v46 = vadd.f32 %v1317_v1, %v1316_v58 }
 0x170   :  { %v1383_v32 = vmul.f32 0.5, %v1294_v21  ;;  %v1412_v20 = vcombine.low %v1380_v59, %v1381_v18  ;;  %v5072_v27 = vadd.f32 %v5016_v55, %v1035_v23  ;;  %v844_v22 = vcombine.low %v5061_v14, %v5065_v40 }
 0x171   :  { %v1300_v62 = vrot.slane %v1299_v61, 1  ;;  %v1306_v37 = vadd.f32 %v1305_v11, %v1304_v17  ;;  %v1313_v28 = vadd.f32 %v1312_v50, %v1311_v13  ;;  %v1319_v39 = vrot.slane %v1318_v46, 2 }
 0x172   :  { %v1413_v26 = vcombine.low %v1382_v24, %v1383_v32  ;;  %v1420_v30 = vrot.slane %v1412_v20, %v4332_v6  ;;  %v1217_v8 = vcombine.high %v5072_v27, %v5072_v27  ;;  %v1224_v31 = vrot.slane %v5072_v27, %v4332_v6 }
 0x173   :  { %v1301_v49 = vadd.f32 %v1300_v62, %v1299_v61  ;;  %v1307_v60 = vrot.slane %v1306_v37, 1  ;;  %v1314_v55 = vrot.slane %v1313_v28, 1  ;;  %v1320_v52 = vadd.f32 %v1319_v39, %v1318_v46 }
 0x174   :  { %v1427_v48 = vrot.slane %v1413_v26, %v4332_v6  ;;  %v1231_v43 = vrot.slane %v1217_v8, %v4332_v6  ;;  %v1232_v0 = vcombine.high %v1224_v31, %v1224_v31  ;;  %v1323_v58 = vsel %vm400_vm0, %v1224_v31, 0.0 }
 0x175   :  { %v1308_v34 = vadd.f32 %v1307_v60, %v1306_v37  ;;  %v1315_v4 = vadd.f32 %v1314_v55, %v1313_v28  ;;  %v1321_v2 = vrot.slane %v1320_v52, 1  ;;  %v1384_v51 = vmul.f32 0.5, %v1301_v49 }
 0x176   :  { %v1428_v35 = vcombine.low %v1420_v30, %v1427_v48  ;;  %v1233_v59 = vcombine.high %v1231_v43, %v1231_v43  ;;  %v1324_v38 = vrot.slane %v1323_v58, 4  ;;  %v1330_v10 = vsel %vm400_vm0, %v1232_v0, 0.0 }
 0x177   :  { %v1322_v19 = vadd.f32 %v1321_v2, %v1320_v52  ;;  %v1385_v17 = vmul.f32 0.5, %v1308_v34  ;;  %v1386_v13 = vmul.f32 0.5, %v1315_v4  ;;  %v1331_v1 = vrot.slane %v1330_v10, 4 }
 0x178   :  { %v5086_v21 = vsub.f32 %v5012_v41, %v1428_v35  ;;  %v1325_v18 = vadd.f32 %v1324_v38, %v1323_v58  ;;  %v1337_v24 = vsel %vm400_vm0, %v1231_v43, 0.0  ;;  %v1344_v23 = vsel %vm400_vm0, %v1233_v59, 0.0 }
 0x179   :  { %v1387_v61 = vmul.f32 0.5, %v1322_v19  ;;  %v1429_v11 = vcombine.low %v1384_v51, %v1385_v17  ;;  %v1332_v50 = vadd.f32 %v1331_v1, %v1330_v10  ;;  %v1338_v46 = vrot.slane %v1337_v24, 4 }
 0x17a   :  { %v1488_v32 = vmul.f32 %v5086_v21, %v5086_v21  ;;  %v1326_v20 = vrot.slane %v1325_v18, 2  ;;  %v1345_v62 = vrot.slane %v1344_v23, 4  ;;  %v1995_v37 = vrot.slane %v4964_v3, %v4863_v15 }
 0x17b   :  { %v1430_v28 = vcombine.low %v1386_v13, %v1387_v61  ;;  %v1437_v41 = vrot.slane %v1429_v11, %v4332_v6  ;;  %v1333_v39 = vrot.slane %v1332_v50, 2  ;;  %v1339_v26 = vadd.f32 %v1338_v46, %v1337_v24 }
 0x17c   :  { %v1496_v30 = vcombine.high %v1488_v32, %v1488_v32  ;;  %v1503_v8 = vrot.slane %v1488_v32, %v4332_v6  ;;  %v1327_v31 = vadd.f32 %v1326_v20, %v1325_v18  ;;  %v1346_v49 = vadd.f32 %v1345_v62, %v1344_v23 }
 0x17d   :  { %v1444_v60 = vrot.slane %v1430_v28, %v4332_v6  ;;  %v1334_v55 = vadd.f32 %v1333_v39, %v1332_v50  ;;  %v1340_v52 = vrot.slane %v1339_v26, 2  ;;  %v845_v48 = vcombine.low %v5063_v36, %v5067_v5 }
 0x17e   :  { %v1510_v43 = vrot.slane %v1496_v30, %v4332_v6  ;;  %v1511_v0 = vcombine.high %v1503_v8, %v1503_v8  ;;  %v1580_v58 = vsel %vm400_vm0, %v1503_v8, 0.0  ;;  %v1328_v34 = vrot.slane %v1327_v31, 1 }
 0x17f   :  { %v1581_v4 = vrot.slane %v1580_v58, 4  ;;  %v1445_v2 = vcombine.low %v1437_v41, %v1444_v60  ;;  %v1341_v51 = vadd.f32 %v1340_v52, %v1339_v26  ;;  %v1999_v35 = vrot.slane %v4964_v3, %v4866_v57 }
 0x180   :  { %v1512_v59 = vcombine.high %v1510_v43, %v1510_v43  ;;  %v1587_v38 = vsel %vm400_vm0, %v1511_v0, 0.0  ;;  %v1594_v10 = vsel %vm400_vm0, %v1510_v43, 0.0  ;;  %v1335_v19 = vrot.slane %v1334_v55, 1 }
 0x181   :  { %v1582_v17 = vadd.f32 %v1581_v4, %v1580_v58  ;;  %v1588_v13 = vrot.slane %v1587_v38, 4  ;;  %v1595_v1 = vrot.slane %v1594_v10, 4  ;;  %v5106_v18 = vsub.f32 %v5049_v12, %v1445_v2 }
 0x182   :  { %v1601_v24 = vsel %vm400_vm0, %v1512_v59, 0.0  ;;  %v1329_v23 = vadd.f32 %v1328_v34, %v1327_v31  ;;  %v1342_v61 = vrot.slane %v1341_v51, 1  ;;  %v1347_v11 = vrot.slane %v1346_v49, 2 }
 0x183   :  { %v1583_v50 = vrot.slane %v1582_v17, 2  ;;  %v1589_v46 = vadd.f32 %v1588_v13, %v1587_v38  ;;  %v1596_v32 = vadd.f32 %v1595_v1, %v1594_v10  ;;  %v1602_v20 = vrot.slane %v1601_v24, 4 }
 0x184   :  { %v1489_v62 = vmul.f32 %v5106_v18, %v5106_v18  ;;  %v1336_v28 = vadd.f32 %v1335_v19, %v1334_v55  ;;  %v1343_v41 = vadd.f32 %v1342_v61, %v1341_v51  ;;  %v1348_v39 = vadd.f32 %v1347_v11, %v1346_v49 }
 0x185   :  { %v1584_v26 = vadd.f32 %v1583_v50, %v1582_v17  ;;  %v1590_v30 = vrot.slane %v1589_v46, 2  ;;  %v1597_v8 = vrot.slane %v1596_v32, 2  ;;  %v1603_v12 = vadd.f32 %v1602_v20, %v1601_v24 }
 0x186   :  { %v1513_v60 = vcombine.high %v1489_v62, %v1489_v62  ;;  %v1520_v52 = vrot.slane %v1489_v62, %v4332_v6  ;;  %v1349_v31 = vrot.slane %v1348_v39, 1  ;;  %v1388_v43 = vmul.f32 0.5, %v1329_v23 }
 0x187   :  { %v1585_v0 = vrot.slane %v1584_v26, 1  ;;  %v1591_v58 = vadd.f32 %v1590_v30, %v1589_v46  ;;  %v1598_v34 = vadd.f32 %v1597_v8, %v1596_v32  ;;  %v1604_v4 = vrot.slane %v1603_v12, 2 }
 0x188   :  { %v1527_v2 = vrot.slane %v1513_v60, %v4332_v6  ;;  %v1528_v59 = vcombine.high %v1520_v52, %v1520_v52  ;;  %v1608_v55 = vsel %vm400_vm0, %v1520_v52, 0.0  ;;  %v1350_v51 = vadd.f32 %v1349_v31, %v1348_v39 }
 0x189   :  { %v1586_v49 = vadd.f32 %v1585_v0, %v1584_v26  ;;  %v1592_v38 = vrot.slane %v1591_v58, 1  ;;  %v1599_v10 = vrot.slane %v1598_v34, 1  ;;  %v1605_v19 = vadd.f32 %v1604_v4, %v1603_v12 }
 0x18a   :  { %v1529_v17 = vcombine.high %v1527_v2, %v1527_v2  ;;  %v1609_v13 = vrot.slane %v1608_v55, 4  ;;  %v1615_v1 = vsel %vm400_vm0, %v1528_v59, 0.0  ;;  %v1622_v24 = vsel %vm400_vm0, %v1527_v2, 0.0 }
 0x18b   :  { %v1593_v23 = vadd.f32 %v1592_v38, %v1591_v58  ;;  %v1600_v61 = vadd.f32 %v1599_v10, %v1598_v34  ;;  %v1606_v11 = vrot.slane %v1605_v19, 1  ;;  %v1692_v50 = vmul.f32 0.5, %v1586_v49 }
 0x18c   :  { %v1610_v46 = vadd.f32 %v1609_v13, %v1608_v55  ;;  %v1616_v32 = vrot.slane %v1615_v1, 4  ;;  %v1623_v20 = vrot.slane %v1622_v24, 4  ;;  %v1629_v62 = vsel %vm400_vm0, %v1529_v17, 0.0 }
 0x18d   :  { %v1607_v39 = vadd.f32 %v1606_v11, %v1605_v19  ;;  %v1693_v26 = vmul.f32 0.5, %v1593_v23  ;;  %v1694_v30 = vmul.f32 0.5, %v1600_v61  ;;  %v1708_v8 = vadd.f32 1e-05, %v1692_v50 }
 0x18e   :  { %v1611_v12 = vrot.slane %v1610_v46, 2  ;;  %v1617_v60 = vadd.f32 %v1616_v32, %v1615_v1  ;;  %v1624_v52 = vadd.f32 %v1623_v20, %v1622_v24  ;;  %v1630_v31 = vrot.slane %v1629_v62, 4 }
 0x18f   :  { %v1695_v0 = vmul.f32 0.5, %v1607_v39  ;;  %v1709_v4 = vadd.f32 1e-05, %v1693_v26  ;;  %4204 = vrsqrt.f32 %v1708_v8  ;;  %v1389_v58 = vmul.f32 0.5, %v1336_v28 }
 0x190   :  { %v1612_v34 = vadd.f32 %v1611_v12, %v1610_v46  ;;  %v1618_v2 = vrot.slane %v1617_v60, 2  ;;  %v1625_v59 = vrot.slane %v1624_v52, 2  ;;  %v1631_v55 = vadd.f32 %v1630_v31, %v1629_v62 }
 0x191   :  { %4206 = vrsqrt.f32 %v1709_v4  ;;  %v1390_v49 = vmul.f32 0.5, %v1343_v41  ;;  %v1391_v38 = vmul.f32 0.5, %v1350_v51  ;;  %v852_v10 = vrot.slane %v844_v22, %v4332_v6 }
 0x192   :  { %v1710_v19 = vadd.f32 1e-05, %v1694_v30  ;;  %v1613_v17 = vrot.slane %v1612_v34, 1  ;;  %v1619_v13 = vadd.f32 %v1618_v2, %v1617_v60  ;;  %v1626_v1 = vadd.f32 %v1625_v59, %v1624_v52 }
 0x193   :  { %v1632_v24 = vrot.slane %v1631_v55, 2  ;;  %v1446_v23 = vcombine.low %v1388_v43, %v1389_v58  ;;  %v1447_v61 = vcombine.low %v1390_v49, %v1391_v38  ;;  %v859_v28 = vrot.slane %v845_v48, %v4332_v6 }
 0x194   :  { %v1711_v11 = vadd.f32 1e-05, %v1695_v0  ;;  %v1614_v41 = vadd.f32 %v1613_v17, %v1612_v34  ;;  %v1620_v51 = vrot.slane %v1619_v13, 1  ;;  %v1627_v50 = vrot.slane %v1626_v1, 1 }
 0x195   :  { %v1633_v46 = vadd.f32 %v1632_v24, %v1631_v55  ;;  %v1454_v14 = vrot.slane %v1446_v23, %v4332_v6  ;;  %v1461_v40 = vrot.slane %v1447_v61, %v4332_v6  ;;  %v860_v22 = vcombine.low %v852_v10, %v859_v28 }
 0x196   :  { %v1621_v32 = vadd.f32 %v1620_v51, %v1619_v13  ;;  %v1628_v20 = vadd.f32 %v1627_v50, %v1626_v1  ;;  %v1696_v62 = vmul.f32 0.5, %v1614_v41  ;;  %v2003_v43 = vrot.slane %v4964_v3, %v4869_v25 }
 0x197   :  { %v1634_v39 = vrot.slane %v1633_v46, 1  ;;  %v1462_v26 = vcombine.low %v1454_v14, %v1461_v40  ;;  %v1036_v36 = vmul.f32 %v5018_v56, %v860_v22  ;;  %v2007_v5 = vrot.slane %v4964_v3, %v4872_v7 }
 0x198   :  { %4208 = vrsqrt.f32 %v1710_v19  ;;  %v1697_v48 = vmul.f32 0.5, %v1621_v32  ;;  %v1698_v30 = vmul.f32 0.5, %v1628_v20  ;;  %v1712_v8 = vadd.f32 1e-05, %v1696_v62 }
 0x199   :  { %v4205_v12 = vpop.eup %4204  ;;  %v1635_v60 = vadd.f32 %v1634_v39, %v1633_v46  ;;  %v5133_v52 = vsub.f32 %v5072_v27, %v1462_v26  ;;  %v5136_v31 = vadd.f32 %v5028_v16, %v1036_v36  ;;  %4210 = vrsqrt.f32 %v1711_v11 }
 0x19a   :  { %v1713_v0 = vadd.f32 1e-05, %v1697_v48  ;;  %v1714_v4 = vadd.f32 1e-05, %v1698_v30  ;;  %4212 = vrsqrt.f32 %v1712_v8  ;;  %v5144_v56 = vcombine.low %v1861_v47, %v1865_v9 }
 0x19b   :  { %v4207_v58 = vpop.eup %4206  ;;  %v1699_v34 = vmul.f32 0.5, %v1635_v60  ;;  %v1490_v27 = vmul.f32 %v5133_v52, %v5133_v52  ;;  %v1234_v16 = vcombine.high %v5136_v31, %v5136_v31  ;;  %v1241_v2 = vrot.slane %v5136_v31, %v4332_v6 }
 0x19c   :  { %4214 = vrsqrt.f32 %v1713_v0  ;;  %v1756_v59 = vcombine.low %v4205_v12, %v4207_v58  ;;  %v5158_v42 = vcombine.low %v1995_v37, %v1999_v35  ;;  %v5160_v47 = vcombine.low %v2003_v43, %v2007_v5 }
 0x19d   :  { %v5162_v9 = vadd.f32 1e-05, %v1699_v34  ;;  %4216 = vrsqrt.f32 %v1714_v4  ;;  %v1530_v55 = vcombine.high %v1490_v27, %v1490_v27  ;;  %v1537_v49 = vrot.slane %v1490_v27, %v4332_v6 }
 0x19e   :  { %v1248_v38 = vrot.slane %v1234_v16, %v4332_v6  ;;  %v1249_v10 = vcombine.high %v1241_v2, %v1241_v2  ;;  %v1351_v19 = vsel %vm400_vm0, %v1241_v2, 0.0  ;;  %v5168_v17 = vrot.slane %v1756_v59, %v4332_v6 }
 0x19f   :  { %v1544_v3 = vrot.slane %v1530_v55, %v4332_v6  ;;  %v1545_v37 = vcombine.high %v1537_v49, %v1537_v49  ;;  %v1636_v35 = vsel %vm400_vm0, %v1537_v49, 0.0  ;;  %v1352_v13 = vrot.slane %v1351_v19, 4 }
 0x1a0   :  { %v1637_v1 = vrot.slane %v1636_v35, 4  ;;  %v1250_v24 = vcombine.high %v1248_v38, %v1248_v38  ;;  %v1358_v23 = vsel %vm400_vm0, %v1249_v10, 0.0  ;;  %v1365_v61 = vsel %vm400_vm0, %v1248_v38, 0.0 }
 0x1a1   :  { %v1546_v28 = vcombine.high %v1544_v3, %v1544_v3  ;;  %v1643_v11 = vsel %vm400_vm0, %v1545_v37, 0.0  ;;  %v1650_v41 = vsel %vm400_vm0, %v1544_v3, 0.0  ;;  %v1353_v51 = vadd.f32 %v1352_v13, %v1351_v19 }
 0x1a2   :  { %v4209_v50 = vpop.eup %4208  ;;  %v1638_v46 = vadd.f32 %v1637_v1, %v1636_v35  ;;  %v1644_v14 = vrot.slane %v1643_v11, 4  ;;  %v1651_v40 = vrot.slane %v1650_v41, 4  ;;  %v1359_v22 = vrot.slane %v1358_v23, 4 }
 0x1a3   :  { %v4211_v32 = vpop.eup %4210  ;;  %v1657_v20 = vsel %vm400_vm0, %v1546_v28, 0.0  ;;  %v1354_v62 = vrot.slane %v1353_v51, 2  ;;  %v1366_v43 = vrot.slane %v1365_v61, 4  ;;  %v1372_v39 = vsel %vm400_vm0, %v1250_v24, 0.0 }
 0x1a4   :  { %v5178_v26 = vpop.eup %4212  ;;  %v1639_v36 = vrot.slane %v1638_v46, 2  ;;  %v1645_v5 = vadd.f32 %v1644_v14, %v1643_v11  ;;  %v1652_v48 = vadd.f32 %v1651_v40, %v1650_v41  ;;  %v1658_v30 = vrot.slane %v1657_v20, 4 }
 0x1a5   :  { %v1355_v8 = vadd.f32 %v1354_v62, %v1353_v51  ;;  %v1360_v12 = vadd.f32 %v1359_v22, %v1358_v23  ;;  %v1367_v60 = vadd.f32 %v1366_v43, %v1365_v61  ;;  %v1373_v0 = vrot.slane %v1372_v39, 4 }
 0x1a6   :  { %v5180_v4 = vpop.eup %4214  ;;  %v1640_v58 = vadd.f32 %v1639_v36, %v1638_v46  ;;  %v1646_v34 = vrot.slane %v1645_v5, 2  ;;  %v1653_v27 = vrot.slane %v1652_v48, 2  ;;  %v1659_v16 = vadd.f32 %v1658_v30, %v1657_v20 }
 0x1a7   :  { %v5182_v2 = vpop.eup %4216  ;;  %v1356_v59 = vrot.slane %v1355_v8, 1  ;;  %v1361_v55 = vrot.slane %v1360_v12, 2  ;;  %v1368_v49 = vrot.slane %v1367_v60, 2  ;;  %v1374_v38 = vadd.f32 %v1373_v0, %v1372_v39 }
 0x1a8   :  { %v1641_v10 = vrot.slane %v1640_v58, 1  ;;  %v1647_v19 = vadd.f32 %v1646_v34, %v1645_v5  ;;  %v1654_v3 = vadd.f32 %v1653_v27, %v1652_v48  ;;  %v1660_v37 = vrot.slane %v1659_v16, 2  ;;  %v5188_v27 = vld [vmem:[%s5346_s2 + $0x22] ss:$4 sm:$0xff] }
 0x1a9   :  { %v1357_v35 = vadd.f32 %v1356_v59, %v1355_v8  ;;  %v1362_v13 = vadd.f32 %v1361_v55, %v1360_v12  ;;  %v1369_v1 = vadd.f32 %v1368_v49, %v1367_v60  ;;  %v1375_v24 = vrot.slane %v1374_v38, 2 }
 0x1aa   :  { %v1642_v23 = vadd.f32 %v1641_v10, %v1640_v58  ;;  %v1648_v61 = vrot.slane %v1647_v19, 1  ;;  %v1655_v28 = vrot.slane %v1654_v3, 1  ;;  %v1661_v11 = vadd.f32 %v1660_v37, %v1659_v16 }
 0x1ab   :  { %v1363_v41 = vrot.slane %v1362_v13, 1  ;;  %v1370_v51 = vrot.slane %v1369_v1, 1  ;;  %v1376_v46 = vadd.f32 %v1375_v24, %v1374_v38  ;;  %v1392_v14 = vmul.f32 0.5, %v1357_v35 }
 0x1ac   :  { %v1649_v40 = vadd.f32 %v1648_v61, %v1647_v19  ;;  %v1656_v22 = vadd.f32 %v1655_v28, %v1654_v3  ;;  %v1662_v20 = vrot.slane %v1661_v11, 1  ;;  %v1700_v62 = vmul.f32 0.5, %v1642_v23 }
 0x1ad   :  { %v1364_v43 = vadd.f32 %v1363_v41, %v1362_v13  ;;  %v1371_v39 = vadd.f32 %v1370_v51, %v1369_v1  ;;  %v1377_v36 = vrot.slane %v1376_v46, 1  ;;  %v1757_v5 = vcombine.low %v4209_v50, %v4211_v32 }
 0x1ae   :  { %v1663_v48 = vadd.f32 %v1662_v20, %v1661_v11  ;;  %v1701_v30 = vmul.f32 0.5, %v1649_v40  ;;  %v1702_v8 = vmul.f32 0.5, %v1656_v22  ;;  %v1716_v12 = vadd.f32 1e-05, %v1700_v62 }
 0x1af   :  { %v1378_v60 = vadd.f32 %v1377_v36, %v1376_v46  ;;  %v1393_v0 = vmul.f32 0.5, %v1364_v43  ;;  %v1394_v58 = vmul.f32 0.5, %v1371_v39  ;;  %v1771_v34 = vrot.slane %v1757_v5, %v4332_v6 }
 0x1b0   :  { %v1703_v16 = vmul.f32 0.5, %v1663_v48  ;;  %v1717_v59 = vadd.f32 1e-05, %v1701_v30  ;;  %v1718_v55 = vadd.f32 1e-05, %v1702_v8  ;;  %4218 = vrsqrt.f32 %v1716_v12 }
 0x1b1   :  { %v1395_v49 = vmul.f32 0.5, %v1378_v60  ;;  %v1463_v50 = vcombine.low %v1392_v14, %v1393_v0  ;;  %v1772_v32 = vcombine.low %v5168_v17, %v1771_v34  ;;  %4220 = vrsqrt.f32 %v5162_v9  ;;  %v4109_v60 = vld [vmem:[#allocation3 + $0x100] sm:$0xff]   ;;  %v4112_v34 = vld [vmem:[#allocation3 + $0x148] sm:$0xff]  }
 0x1b2   :  { %v1719_v38 = vadd.f32 1e-05, %v1703_v16  ;;  %4222 = vrsqrt.f32 %v1717_v59  ;;  %v1869_v10 = vrot.slane %v5188_v27, %v4837_v54  ;;  %v1873_v19 = vrot.slane %v5188_v27, %v4840_v44 }
 0x1b3   :  { %4224 = vrsqrt.f32 %v1718_v55  ;;  %v1464_v3 = vcombine.low %v1394_v58, %v1395_v49  ;;  %v1471_v37 = vrot.slane %v1463_v50, %v4332_v6  ;;  %v1828_v35 = vmul.f32 %v1772_v32, %v5086_v21  ;;  %v4111_v50 = vld [vmem:[#allocation3 + $0x180] sm:$0xff]  }
 0x1b4   :  { %v1923_v13 = vrot.slane %v5046_v63, %v4332_v6  ;;  %4226 = vrsqrt.f32 %v1719_v38  ;;  %v1930_v1 = vrot.slane %v5144_v56, %v4332_v6  ;;  %v2065_v24 = vrot.slane %v5158_v42, %v4332_v6  ;;  %v5220_v42 = vld [vmem:[%s5346_s2 + $0x23] ss:$4 sm:$0xff]  ;;  %s4289_s2 = smov [#allocation6]  }
 0x1b5   :  { %v1478_v9 = vrot.slane %v1464_v3, %v4332_v6  ;;  %v1970_v17 = vmul.f32 %v5030_v33, %v1828_v35  ;;  %v2072_v23 = vrot.slane %v5160_v47, %v4332_v6  ;;  %v1877_v21 = vrot.slane %v5188_v27, %v4843_v45  ;;  %s3571_s7 = sshll.u32 %s4289_s2, 4  ;;  %s3572_s7 = int_to_ptr.vmem [resolvable:$true] %s3571_s7 }
 0x1b6   :  { %v1881_v63 = vrot.slane %v5188_v27, %v4846_v29  ;;  %v5212_v61 = vcombine.low %v1869_v10, %v1873_v19  ;;  %v1773_v56 = vcombine.low %v5178_v26, %v5180_v4  ;;  %v5226_v46 = vcombine.low %v1923_v13, %v1930_v1  ;;  %v4114_v10 = vld [vmem:[#allocation3 + $0x1c8] sm:$0xff]   ;;  %s4258_s8 = scalar_lea.vmem %s3572_s7, 32  ;;  %p4263_p9 = scmp.lt.s32.totalorder %s3572_s7, %s3572_s7 }
 0x1b7   :  { %v1479_v28 = vcombine.low %v1471_v37, %v1478_v9  ;;  %v2112_v33 = vadd.f32 %v5038_v53, %v1970_v17  ;;  %v5228_v14 = vcombine.low %v2065_v24, %v2072_v23  ;;  %v2011_v20 = vrot.slane %v5220_v42, %v4837_v54  ;;  %v4116_v23 = vld [vmem:[#allocation3 + $0x150] sm:$0xff]   ;;  %p4259_p8 = scmp.ne.s32.totalorder %s3572_s7, %s4258_s8  ;;  %p4264_p10 = scmp.lt.s32.totalorder %s4258_s8, %s4258_s8 }
 0x1b8   :  { %v5230_v53 = vcombine.low %v1877_v21, %v1881_v63  ;;  %v1940_v26 = vrot.slane %v5212_v61, %v4332_v6  ;;  %v1781_v39 = vrot.slane %v1773_v56, %v4332_v6  ;;  %v2015_v36 = vrot.slane %v5220_v42, %v4840_v44 }
 0x1b9   :  { %v5223_v47 = vsub.f32 %v5136_v31, %v1479_v28  ;;  %v2127_v11 = vrot.slane %v2112_v33, %v4332_v6  ;;  %v2120_v41 = vcombine.high %v2112_v33, %v2112_v33  ;;  %v2019_v5 = vrot.slane %v5220_v42, %v4843_v45  ;;  %v4115_v28 = vld [vmem:[#allocation3 + $0x188] sm:$0xff]   ;;  %p4265_p11 = por %p4264_p10, %p4263_p9 }
 0x1ba   :  { %v4219_v51 = vpop.eup %4218  ;;  %v2023_v59 = vrot.slane %v5220_v42, %v4846_v29  ;;  %v4113_v29 = vld [vmem:[#allocation3 + $0x108] sm:$0xff]   ;;  %v1947_v56 = vrot.slane %v5230_v53, %v4332_v6 }
 0x1bb   :  { %v4221_v4 = vpop.eup %4220  ;;  %v1491_v40 = vmul.f32 %v5223_v47, %v5223_v47  ;;  %v2135_v22 = vcombine.high %v2127_v11, %v2127_v11  ;;  %v2134_v31 = vrot.slane %v2120_v41, %v4332_v6  ;;  %v2204_v54 = vpack.c.bf16 %v2127_v11, %v2127_v11  ;;  %p4266_p12 = pnand %p4265_p11, %p4259_p8 }
 0x1bc   :  { %v4223_v62 = vpop.eup %4222  ;;  %v1774_v43 = vcombine.low %v5182_v2, %v4221_v4  ;;  %v2074_v11 = vcombine.low %v2011_v20, %v2015_v36  ;;  %v4119_v20 = vld [vmem:[#allocation3 + $0x190] sm:$0xff]   ;;  %v1948_v36 = vcombine.low %v1940_v26, %v1947_v56 }
 0x1bd   :  { %v4225_v48 = vpop.eup %4224  ;;  %v1547_v30 = vcombine.high %v1491_v40, %v1491_v40  ;;  %v1554_v8 = vrot.slane %v1491_v40, %v4332_v6  ;;  %v2205_v12 = vpack.c.bf16 %v2135_v22, %v2135_v22  ;;  %v2136_v0 = vcombine.high %v2134_v31, %v2134_v31  ;;  %v4118_v22 = vld [vmem:[#allocation3 + $0x1d0] sm:$0xff]  }
 0x1be   :  { %v4227_v58 = vpop.eup %4226  ;;  %v1788_v2 = vrot.slane %v1774_v43, %v4332_v6  ;;  %v1790_v16 = vcombine.low %v4219_v51, %v4223_v62  ;;  %v2206_v38 = vpack.c.bf16 %v2134_v31, %v2134_v31  ;;  %v2075_v43 = vcombine.low %v2019_v5, %v2023_v59 }
 0x1bf   :  { %v1561_v44 = vrot.slane %v1547_v30, %v4332_v6  ;;  %v1562_v55 = vcombine.high %v1554_v8, %v1554_v8  ;;  %v1664_v45 = vsel %vm400_vm0, %v1554_v8, 0.0  ;;  %3276 = vmatprep.mubr.bf16.mxu0 %v2205_v12  ;;  %v2207_v49 = vpack.c.bf16 %v2136_v0, %v2136_v0  ;;  %v4120_v12 = vld [vmem:[#allocation3 + $0x158] sm:$0xff]  }
 0x1c0   :  { %v1665_v32 = vrot.slane %v1664_v45, 4  ;;  %3277 = vmatmul.mubr.bf16.vlgmr.msra.gmra.mrb[16].mxu0 %v2204_v54  ;;  %v1789_v19 = vcombine.low %v1781_v39, %v1788_v2  ;;  %v1791_v3 = vcombine.low %v4225_v48, %v4227_v58  ;;  %v1798_v9 = vrot.slane %v1790_v16, %v4332_v6  ;;  %v4122_v54 = vld [vmem:[#allocation3 + $0x1d8] sm:$0xff]  }
 0x1c1   :  { %v1563_v37 = vcombine.high %v1561_v44, %v1561_v44  ;;  %v1671_v35 = vsel %vm400_vm0, %v1562_v55, 0.0  ;;  %v1678_v13 = vsel %vm400_vm0, %v1561_v44, 0.0  ;;  %3935 = vmatpush3.bf16.msra.mxu0 %v4109_v60  ;;  %3316 = vmatprep.mubr.bf16.mxu1 %v2207_v49  ;;  %v2082_v60 = vrot.slane %v2074_v11, %v4332_v6  ;;  %v4121_v16 = vld [vmem:[#allocation3 + $0x118] sm:$0xff]  }
 0x1c2   :  { %v1666_v17 = vadd.f32 %v1665_v32, %v1664_v45  ;;  %v1672_v1 = vrot.slane %v1671_v35, 4  ;;  %v1679_v24 = vrot.slane %v1678_v13, 4  ;;  %3317 = vmatmul.mubr.bf16.vlgmr.msra.gmra.mrb[16].mxu1 %v2206_v38  ;;  %3936 = vmatprep.subr.bf16.mxu0 %v4112_v34  ;;  %v1829_v21 = vmul.f32 %v1789_v19, %v5106_v18  ;;  %v4117_v18 = vld [vmem:[#allocation3 + $0x110] sm:$0xff]   ;;  %v4124_v45 = vld [vmem:[#allocation3 + $0x160] sm:$0xff]   ;;  %v4123_v32 = vld [vmem:[#allocation3 + $0x198] sm:$0xff]  }
 0x1c3   :  { %v1685_v63 = vsel %vm400_vm0, %v1563_v37, 0.0  ;;  %3957 = vmatpush3.bf16.msra.mxu1 %v4111_v50  ;;  %v1805_v33 = vrot.slane %v1791_v3, %v4332_v6  ;;  %v2089_v59 = vrot.slane %v2075_v43, %v4332_v6  ;;  %v4126_v3 = vld [vmem:[#allocation3 + $0x1e0] sm:$0xff]  }
 0x1c4   :  { %v1667_v41 = vrot.slane %v1666_v17, 2  ;;  %v1673_v51 = vadd.f32 %v1672_v1, %v1671_v35  ;;  %v1680_v4 = vadd.f32 %v1679_v24, %v1678_v13  ;;  %v1686_v40 = vrot.slane %v1685_v63, 4  ;;  %3958 = vmatprep.subr.bf16.mxu1 %v4114_v10  ;;  %v4125_v13 = vld [vmem:[#allocation3 + $0x120] sm:$0xff]  }
 0x1c5   :  { %3937 = vmatpush3.bf16.msra.mxu0 %v4113_v29  ;;  %v1971_v31 = vmul.f32 %v5226_v46, %v1829_v21  ;;  %v1806_v62 = vcombine.low %v1798_v9, %v1805_v33  ;;  %v2090_v9 = vcombine.low %v2082_v60, %v2089_v59  ;;  %v4128_v21 = vld [vmem:[#allocation3 + $0x168] sm:$0xff]   ;;  %v1885_v60 = vrot.slane %v5188_v27, %v4863_v15  ;;  %v4141_v59 = vld [vmem:[#allocation3 + $0x200] sm:$0xff]  }
 0x1c6   :  { %v1668_v39 = vadd.f32 %v1667_v41, %v1666_v17  ;;  %v1674_v48 = vrot.slane %v1673_v51, 2  ;;  %v1681_v30 = vrot.slane %v1680_v4, 2  ;;  %v1687_v8 = vadd.f32 %v1686_v40, %v1685_v63  ;;  %3938 = vmatprep.subr.bf16.mxu0 %v4116_v23  ;;  %v4130_v41 = vld [vmem:[#allocation3 + $0x1e8] sm:$0xff]  }
 0x1c7   :  { %3959 = vmatpush3.bf16.msra.mxu1 %v4115_v28  ;;  %v2113_v53 = vadd.f32 %v5228_v14, %v1971_v31  ;;  %v1830_v14 = vmul.f32 %v1806_v62, %v5133_v52  ;;  %v4127_v28 = vld [vmem:[#allocation3 + $0x1a0] sm:$0xff]   ;;  %v4131_v31 = vld [vmem:[#allocation3 + $0x1a8] sm:$0xff]   ;;  %v4133_v62 = vld [vmem:[#allocation3 + $0x130] sm:$0xff]  }
 0x1c8   :  { %v1669_v46 = vrot.slane %v1668_v39, 1  ;;  %v1675_v0 = vadd.f32 %v1674_v48, %v1673_v51  ;;  %v1682_v58 = vadd.f32 %v1681_v30, %v1680_v4  ;;  %v1688_v5 = vrot.slane %v1687_v8, 2  ;;  %3960 = vmatprep.subr.bf16.mxu1 %v4118_v22  ;;  %v4129_v51 = vld [vmem:[#allocation3 + $0x128] sm:$0xff]   ;;  %v4132_v22 = vld [vmem:[#allocation3 + $0x170] sm:$0xff]  }
 0x1c9   :  { %v5266_v34 = vrot.slane %v2113_v53, %v4332_v6  ;;  %3939 = vmatpush3.bf16.msra.mxu0 %v4117_v18  ;;  %v2137_v2 = vcombine.high %v2113_v53, %v2113_v53  ;;  %v1972_v29 = vmul.f32 %v1948_v36, %v1830_v14  ;;  %v4134_v18 = vld [vmem:[#allocation3 + $0x1f0] sm:$0xff]   ;;  %v4140_v36 = vld [vmem:[#allocation3 + $0x240] sm:$0xff]  }
 0x1ca   :  { %v1670_v61 = vadd.f32 %v1669_v46, %v1668_v39  ;;  %v1676_v26 = vrot.slane %v1675_v0, 1  ;;  %v1683_v44 = vrot.slane %v1682_v58, 1  ;;  %v1689_v55 = vadd.f32 %v1688_v5, %v1687_v8  ;;  %3940 = vmatprep.subr.bf16.mxu0 %v4120_v12  ;;  %v4136_v39 = vld [vmem:[#allocation3 + $0x178] sm:$0xff]   ;;  %v4135_v48 = vld [vmem:[#allocation3 + $0x1b0] sm:$0xff]  }
 0x1cb   :  { %v2152_v49 = vcombine.high %v5266_v34, %v5266_v34  ;;  %v5273_v50 = vrot.slane %v2137_v2, %v4332_v6  ;;  %3961 = vmatpush3.bf16.msra.mxu1 %v4119_v20  ;;  %v2114_v4 = vadd.f32 %v2090_v9, %v1972_v29  ;;  %v4138_v8 = vld [vmem:[#allocation3 + $0x1f8] sm:$0xff]   ;;  %v1889_v46 = vrot.slane %v5188_v27, %v4866_v57  ;;  %v4148_v9 = vld [vmem:[#allocation3 + $0x250] sm:$0xff]  }
 0x1cc   :  { %v1677_v38 = vadd.f32 %v1676_v26, %v1675_v0  ;;  %v1684_v10 = vadd.f32 %v1683_v44, %v1682_v58  ;;  %v1690_v19 = vrot.slane %v1689_v55, 1  ;;  %v1704_v52 = vmul.f32 0.5, %v1670_v61  ;;  %3962 = vmatprep.subr.bf16.mxu1 %v4122_v54  ;;  %v4137_v12 = vld [vmem:[#allocation3 + $0x138] sm:$0xff]  }
 0x1cd   :  { %v2209_v37 = vpack.c.bf16 %v2152_v49, %v2152_v49  ;;  %v2153_v35 = vcombine.high %v5273_v50, %v5273_v50  ;;  %3941 = vmatpush3.bf16.msra.mxu0 %v4121_v16  ;;  %v2154_v43 = vcombine.high %v2114_v4, %v2114_v4  ;;  %v5278_v30 = vrot.slane %v2114_v4, %v4332_v6  ;;  %v4139_v0 = vld [vmem:[#allocation3 + $0x1b8] sm:$0xff]   ;;  %v4142_v16 = vld [vmem:[#allocation3 + $0x2c0] sm:$0xff]  }
 0x1ce   :  { %v1691_v17 = vadd.f32 %v1690_v19, %v1689_v55  ;;  %v1705_v1 = vmul.f32 0.5, %v1677_v38  ;;  %v1706_v24 = vmul.f32 0.5, %v1684_v10  ;;  %v1720_v23 = vadd.f32 1e-05, %v1704_v52  ;;  %3942 = vmatprep.subr.bf16.mxu0 %v4124_v45  ;;  %v4144_v45 = vld [vmem:[#allocation3 + $0x248] sm:$0xff]   ;;  %v4143_v38 = vld [vmem:[#allocation3 + $0x280] sm:$0xff]  }
 0x1cf   :  { %3356 = vmatprep.mubr.bf16.mxu0 %v2209_v37  ;;  %v2211_v63 = vpack.c.bf16 %v2153_v35, %v2153_v35  ;;  %3963 = vmatpush3.bf16.msra.mxu1 %v4123_v32  ;;  %v5281_v53 = vrot.slane %v2154_v43, %v4332_v6  ;;  %v2169_v58 = vcombine.high %v5278_v30, %v5278_v30  ;;  %v4156_v4 = vld [vmem:[#allocation3 + $0x260] sm:$0xff]   ;;  %v4160_v43 = vld [vmem:[#allocation3 + $0x268] sm:$0xff]  }
 0x1d0   :  { %v1707_v33 = vmul.f32 0.5, %v1691_v17  ;;  %v1721_v56 = vadd.f32 1e-05, %v1705_v1  ;;  %v1722_v11 = vadd.f32 1e-05, %v1706_v24  ;;  %4228 = vrsqrt.f32 %v1720_v23  ;;  %3964 = vmatprep.subr.bf16.mxu1 %v4126_v3  ;;  %v4150_v17 = vld [vmem:[#allocation3 + $0x2d0] sm:$0xff]  }
 0x1d1   :  { %3396 = vmatprep.mubr.bf16.mxu1 %v2211_v63  ;;  %3943 = vmatpush3.bf16.msra.mxu0 %v4125_v13  ;;  %v1893_v5 = vrot.slane %v5188_v27, %v4869_v25  ;;  %v1897_v54 = vrot.slane %v5188_v27, %v4872_v7  ;;  %v2170_v61 = vcombine.high %v5281_v53, %v5281_v53  ;;  %v4145_v13 = vld [vmem:[#allocation3 + $0x208] sm:$0xff]   ;;  %v4151_v63 = vld [vmem:[#allocation3 + $0x290] sm:$0xff]  }
 0x1d2   :  { %v1723_v40 = vadd.f32 1e-05, %v1707_v33  ;;  %4230 = vrsqrt.f32 %v1721_v56  ;;  %3944 = vmatprep.subr.bf16.mxu0 %v4128_v21  ;;  %v2208_v55 = vpack.c.bf16 %v5266_v34, %v5266_v34  ;;  %v1949_v49 = vcombine.low %v1885_v60, %v1889_v46  ;;  %v4146_v34 = vld [vmem:[#allocation3 + $0x2c8] sm:$0xff]   ;;  %v4152_v21 = vld [vmem:[#allocation3 + $0x258] sm:$0xff]   ;;  %v4165_v60 = vld [vmem:[#allocation3 + $0x230] sm:$0xff]  }
 0x1d3   :  { %4232 = vrsqrt.f32 %v1722_v11  ;;  %3965 = vmatpush3.bf16.msra.mxu1 %v4127_v28  ;;  %v2027_v27 = vrot.slane %v5220_v42, %v4863_v15  ;;  %v2213_v32 = vpack.c.bf16 %v2169_v58, %v2169_v58  ;;  %v1950_v19 = vcombine.low %v1893_v5, %v1897_v54  ;;  %v4154_v28 = vld [vmem:[#allocation3 + $0x2d8] sm:$0xff]   ;;  %v4167_v58 = vld [vmem:[#allocation3 + $0x2b0] sm:$0xff]  }
 0x1d4   :  { %3966 = vmatprep.subr.bf16.mxu1 %v4130_v41  ;;  %4234 = vrsqrt.f32 %v1723_v40  ;;  %v2031_v52 = vrot.slane %v5220_v42, %v4866_v57  ;;  %v2210_v3 = vpack.c.bf16 %v5273_v50, %v5273_v50  ;;  %v2035_v37 = vrot.slane %v5220_v42, %v4869_v25  ;;  %v4147_v50 = vld [vmem:[#allocation3 + $0x288] sm:$0xff]   ;;  %v4153_v33 = vld [vmem:[#allocation3 + $0x218] sm:$0xff]  }
 0x1d5   :  { %3945 = vmatpush3.bf16.msra.mxu0 %v4129_v51  ;;  %v2039_v15 = vrot.slane %v5220_v42, %v4872_v7  ;;  %v2215_v35 = vpack.c.bf16 %v2170_v61, %v2170_v61  ;;  %v1957_v25 = vrot.slane %v1949_v49, %v4332_v6  ;;  %v4149_v7 = vld [vmem:[#allocation3 + $0x210] sm:$0xff]   ;;  %v1964_v1 = vrot.slane %v1950_v19, %v4332_v6  ;;  %v4155_v40 = vld [vmem:[#allocation3 + $0x298] sm:$0xff]   ;;  %v4177_v19 = vld [vmem:[#allocation3 + $0x308] sm:$0xff]  }
 0x1d6   :  { %3946 = vmatprep.subr.bf16.mxu0 %v4132_v22  ;;  %v2091_v24 = vcombine.low %v2027_v27, %v2031_v52  ;;  %v4158_v22 = vld [vmem:[#allocation3 + $0x2e0] sm:$0xff]   ;;  %v4170_v54 = vld [vmem:[#allocation3 + $0x2f8] sm:$0xff]   ;;  %v4180_v52 = vld [vmem:[#allocation3 + $0x350] sm:$0xff]  }
 0x1d7   :  { %3967 = vmatpush3.bf16.msra.mxu1 %v4131_v31  ;;  %v2092_v23 = vcombine.low %v2035_v37, %v2039_v15  ;;  %v1965_v11 = vcombine.low %v1957_v25, %v1964_v1  ;;  %v4157_v31 = vld [vmem:[#allocation3 + $0x220] sm:$0xff]   ;;  %v4184_v37 = vld [vmem:[#allocation3 + $0x358] sm:$0xff]   ;;  %v4194_v25 = vld [vmem:[#allocation3 + $0x3e8] sm:$0xff]  }
 0x1d8   :  { %3968 = vmatprep.subr.bf16.mxu1 %v4134_v18  ;;  %v2099_v41 = vrot.slane %v2091_v24, %v4332_v6  ;;  %v4175_v27 = vld [vmem:[#allocation3 + $0x380] sm:$0xff]   ;;  %v4186_v15 = vld [vmem:[#allocation3 + $0x3d8] sm:$0xff]   ;;  %v4195_v1 = vld [vmem:[#allocation3 + $0x3a8] sm:$0xff]  }
 0x1d9   :  { %3947 = vmatpush3.bf16.msra.mxu0 %v4133_v62  ;;  %v2106_v51 = vrot.slane %v2092_v23, %v4332_v6  ;;  %v4198_v24 = vld [vmem:[#allocation3 + $0x3f0] sm:$0xff]  }
 0x1da   :  { %v4229_v20 = vpop.eup %4228  ;;  %3948 = vmatprep.subr.bf16.mxu0 %v4136_v39  ;;  %v4159_v39 = vld [vmem:[#allocation3 + $0x2a0] sm:$0xff]   ;;  %v4197_v23 = vld [vmem:[#allocation3 + $0x330] sm:$0xff]  }
 0x1db   :  { %3969 = vmatpush3.bf16.msra.mxu1 %v4135_v48  ;;  %v2107_v62 = vcombine.low %v2099_v41, %v2106_v51  ;;  %v4161_v48 = vld [vmem:[#allocation3 + $0x228] sm:$0xff]  }
 0x1dc   :  { %v4231_v2 = vpop.eup %4230  ;;  %3970 = vmatprep.subr.bf16.mxu1 %v4138_v8 }
 0x1dd   :  { %v4233_v14 = vpop.eup %4232  ;;  %3949 = vmatpush3.bf16.msra.mxu0 %v4137_v12  ;;  %v1807_v26 = vcombine.low %v4229_v20, %v4231_v2  ;;  %v4164_v12 = vld [vmem:[#allocation3 + $0x270] sm:$0xff]   ;;  %v4163_v20 = vld [vmem:[#allocation3 + $0x2a8] sm:$0xff]   ;;  %v4169_v2 = vld [vmem:[#allocation3 + $0x238] sm:$0xff]  }
 0x1de   :  { %v4235_v44 = vpop.eup %4234  ;;  %3978 = vmatprep.subr.bf16.mxu0 %v4140_v36  ;;  %v4166_v36 = vld [vmem:[#allocation3 + $0x2f0] sm:$0xff]  }
 0x1df   :  { %3971 = vmatpush3.bf16.msra.mxu1 %v4139_v0  ;;  %v1808_v10 = vcombine.low %v4233_v14, %v4235_v44  ;;  %v1815_v29 = vrot.slane %v1807_v26, %v4332_v6  ;;  %v4168_v0 = vld [vmem:[#allocation3 + $0x278] sm:$0xff]   ;;  %v4172_v14 = vld [vmem:[#allocation3 + $0x340] sm:$0xff]  }
 0x1e0   :  { %3357 = vmatmul.mubr.bf16.vlgmr.msra.gmra.mrb[20].mxu0 %v2208_v55  ;;  %4000 = vmatprep.subr.bf16.mxu1 %v4142_v16  ;;  %v4174_v26 = vld [vmem:[#allocation3 + $0x3c0] sm:$0xff]  }
 0x1e1   :  { %3979 = vmatpush3.bf16.msra.mxu0 %v4141_v59  ;;  %3436 = vmatprep.mubr.bf16.mxu0 %v2213_v32  ;;  %v1822_v57 = vrot.slane %v1808_v10, %v4332_v6  ;;  %v4171_v59 = vld [vmem:[#allocation3 + $0x2b8] sm:$0xff]   ;;  %v4173_v44 = vld [vmem:[#allocation3 + $0x300] sm:$0xff]   ;;  %v2214_v32 = vpack.c.bf16 %v5281_v53, %v5281_v53  ;;  %v4183_v53 = vld [vmem:[#allocation3 + $0x390] sm:$0xff]  }
 0x1e2   :  { %3397 = vmatmul.mubr.bf16.vlgmr.msra.gmra.mrb[20].mxu1 %v2210_v3  ;;  %3980 = vmatprep.subr.bf16.mxu0 %v4144_v45  ;;  %v2212_v45 = vpack.c.bf16 %v5278_v30, %v5278_v30  ;;  %v4179_v30 = vld [vmem:[#allocation3 + $0x388] sm:$0xff]   ;;  %v4182_v3 = vld [vmem:[#allocation3 + $0x3d0] sm:$0xff]  }
 0x1e3   :  { %4001 = vmatpush3.bf16.msra.mxu1 %v4143_v38  ;;  %3476 = vmatprep.mubr.bf16.mxu1 %v2215_v35  ;;  %v1823_v42 = vcombine.low %v1815_v29, %v1822_v57  ;;  %v4178_v38 = vld [vmem:[#allocation3 + $0x3c8] sm:$0xff]   ;;  %v4185_v35 = vld [vmem:[#allocation3 + $0x318] sm:$0xff]   ;;  %v4190_v57 = vld [vmem:[#allocation3 + $0x3e0] sm:$0xff]  }
 0x1e4   :  { %4002 = vmatprep.subr.bf16.mxu1 %v4146_v34  ;;  %v4181_v34 = vld [vmem:[#allocation3 + $0x310] sm:$0xff]   ;;  %v4187_v29 = vld [vmem:[#allocation3 + $0x398] sm:$0xff]  }
 0x1e5   :  { %3981 = vmatpush3.bf16.msra.mxu0 %v4145_v13  ;;  %v1831_v56 = vmul.f32 %v1823_v42, %v5223_v47  ;;  %v4162_v47 = vld [vmem:[#allocation3 + $0x2e8] sm:$0xff]   ;;  %v4188_v13 = vld [vmem:[#allocation3 + $0x360] sm:$0xff]   ;;  %v4196_v42 = vld [vmem:[#allocation3 + $0x370] sm:$0xff]  }
 0x1e6   :  { %3982 = vmatprep.subr.bf16.mxu0 %v4148_v9  ;;  %v4189_v9 = vld [vmem:[#allocation3 + $0x320] sm:$0xff]  }
 0x1e7   :  { %4003 = vmatpush3.bf16.msra.mxu1 %v4147_v50  ;;  %v1973_v18 = vmul.f32 %v1965_v11, %v1831_v56  ;;  %v4192_v50 = vld [vmem:[#allocation3 + $0x368] sm:$0xff]   ;;  %v4203_v56 = vld [vmem:[#allocation3 + $0x3b8] sm:$0xff]  }
 0x1e8   :  { %4004 = vmatprep.subr.bf16.mxu1 %v4150_v17  ;;  %v4191_v17 = vld [vmem:[#allocation3 + $0x3a0] sm:$0xff]  }
 0x1e9   :  { %3983 = vmatpush3.bf16.msra.mxu0 %v4149_v7  ;;  %v2115_v8 = vadd.f32 %v2107_v62, %v1973_v18  ;;  %v4193_v7 = vld [vmem:[#allocation3 + $0x328] sm:$0xff]  }
 0x1ea   :  { %3984 = vmatprep.subr.bf16.mxu0 %v4152_v21  ;;  %v4200_v21 = vld [vmem:[#allocation3 + $0x378] sm:$0xff]  }
 0x1eb   :  { %4005 = vmatpush3.bf16.msra.mxu1 %v4151_v63  ;;  %v2171_v46 = vcombine.high %v2115_v8, %v2115_v8  ;;  %v5315_v5 = vrot.slane %v2115_v8, %v4332_v6  ;;  %v4199_v63 = vld [vmem:[#allocation3 + $0x3b0] sm:$0xff]  }
 0x1ec   :  { %4006 = vmatprep.subr.bf16.mxu1 %v4154_v28  ;;  %v4202_v28 = vld [vmem:[#allocation3 + $0x3f8] sm:$0xff]  }
 0x1ed   :  { %3985 = vmatpush3.bf16.msra.mxu0 %v4153_v33  ;;  %v5318_v16 = vrot.slane %v2171_v46, %v4332_v6  ;;  %v2186_v61 = vcombine.high %v5315_v5, %v5315_v5  ;;  %v4176_v6 = vld [vmem:[#allocation3 + $0x348] sm:$0xff]   ;;  %v4201_v33 = vld [vmem:[#allocation3 + $0x338] sm:$0xff]   ;;  %v2216_v11 = vpack.c.bf16 %v5315_v5, %v5315_v5 }
 0x1ee   :  { %3986 = vmatprep.subr.bf16.mxu0 %v4156_v4 }
 0x1ef   :  { %4007 = vmatpush3.bf16.msra.mxu1 %v4155_v40  ;;  %v2187_v55 = vcombine.high %v5318_v16, %v5318_v16  ;;  %v2217_v49 = vpack.c.bf16 %v2186_v61, %v2186_v61  ;;  %v2218_v41 = vpack.c.bf16 %v5318_v16, %v5318_v16 }
 0x1f0   :  { %4008 = vmatprep.subr.bf16.mxu1 %v4158_v22 }
 0x1f1   :  { %3987 = vmatpush3.bf16.msra.mxu0 %v4157_v31  ;;  %v2219_v10 = vpack.c.bf16 %v2187_v55, %v2187_v55 }
 0x1f2   :  { %3988 = vmatprep.subr.bf16.mxu0 %v4160_v43 }
 0x1f3   :  { %4009 = vmatpush3.bf16.msra.mxu1 %v4159_v39 }
 0x1f4   :  { %4010 = vmatprep.subr.bf16.mxu1 %v4162_v47 }
 0x1f5   :  { %3989 = vmatpush3.bf16.msra.mxu0 %v4161_v48 }
 0x1f6   :  { %3990 = vmatprep.subr.bf16.mxu0 %v4164_v12 }
 0x1f7   :  { %4011 = vmatpush3.bf16.msra.mxu1 %v4163_v20 }
 0x1f8   :  { %4012 = vmatprep.subr.bf16.mxu1 %v4166_v36 }
 0x1f9   :  { %3991 = vmatpush3.bf16.msra.mxu0 %v4165_v60 }
 0x1fa   :  { %3992 = vmatprep.subr.bf16.mxu0 %v4168_v0 }
 0x1fb   :  { %4013 = vmatpush3.bf16.msra.mxu1 %v4167_v58 }
 0x1fc   :  { %4014 = vmatprep.subr.bf16.mxu1 %v4170_v54 }
 0x1fd   :  { %3993 = vmatpush3.bf16.msra.mxu0 %v4169_v2 }
 0x1fe   :  { %4022 = vmatprep.subr.bf16.mxu0 %v4172_v14 }
 0x1ff   :  { %4015 = vmatpush3.bf16.msra.mxu1 %v4171_v59 }
 0x200   :  { %3437 = vmatmul.mubr.bf16.vlgmr.msra.gmra.mrb[24].mxu0 %v2212_v45  ;;  %4044 = vmatprep.subr.bf16.mxu1 %v4174_v26 }
 0x201   :  { %4023 = vmatpush3.bf16.msra.mxu0 %v4173_v44  ;;  %3516 = vmatprep.mubr.bf16.mxu0 %v2217_v49 }
 0x202   :  { %3477 = vmatmul.mubr.bf16.vlgmr.msra.gmra.mrb[24].mxu1 %v2214_v32  ;;  %4024 = vmatprep.subr.bf16.mxu0 %v4176_v6 }
 0x203   :  { %4045 = vmatpush3.bf16.msra.mxu1 %v4175_v27  ;;  %3556 = vmatprep.mubr.bf16.mxu1 %v2219_v10 }
 0x204   :  { %4046 = vmatprep.subr.bf16.mxu1 %v4178_v38 }
 0x205   :  { %4025 = vmatpush3.bf16.msra.mxu0 %v4177_v19 }
 0x206   :  { %4026 = vmatprep.subr.bf16.mxu0 %v4180_v52 }
 0x207   :  { %4047 = vmatpush3.bf16.msra.mxu1 %v4179_v30 }
 0x208   :  { %4048 = vmatprep.subr.bf16.mxu1 %v4182_v3 }
 0x209   :  { %4027 = vmatpush3.bf16.msra.mxu0 %v4181_v34 }
 0x20a   :  { %4028 = vmatprep.subr.bf16.mxu0 %v4184_v37 }
 0x20b   :  { %4049 = vmatpush3.bf16.msra.mxu1 %v4183_v53 }
 0x20c   :  { %4050 = vmatprep.subr.bf16.mxu1 %v4186_v15 }
 0x20d   :  { %4029 = vmatpush3.bf16.msra.mxu0 %v4185_v35 }
 0x20e   :  { %4030 = vmatprep.subr.bf16.mxu0 %v4188_v13 }
 0x20f   :  { %4051 = vmatpush3.bf16.msra.mxu1 %v4187_v29 }
 0x210   :  { %4052 = vmatprep.subr.bf16.mxu1 %v4190_v57 }
 0x211   :  { %4031 = vmatpush3.bf16.msra.mxu0 %v4189_v9 }
 0x212   :  { %4032 = vmatprep.subr.bf16.mxu0 %v4192_v50 }
 0x213   :  { %4053 = vmatpush3.bf16.msra.mxu1 %v4191_v17 }
 0x214   :  { %4054 = vmatprep.subr.bf16.mxu1 %v4194_v25 }
 0x215   :  { %4033 = vmatpush3.bf16.msra.mxu0 %v4193_v7 }
 0x216   :  { %4034 = vmatprep.subr.bf16.mxu0 %v4196_v42 }
 0x217   :  { %4055 = vmatpush3.bf16.msra.mxu1 %v4195_v1 }
 0x218   :  { %4056 = vmatprep.subr.bf16.mxu1 %v4198_v24 }
 0x219   :  { %4035 = vmatpush3.bf16.msra.mxu0 %v4197_v23 }
 0x21a   :  { %4036 = vmatprep.subr.bf16.mxu0 %v4200_v21 }
 0x21b   :  { %4057 = vmatpush3.bf16.msra.mxu1 %v4199_v63 }
 0x21c   :  { %4058 = vmatprep.subr.bf16.mxu1 %v4202_v28 }
 0x21d   :  { %4037 = vmatpush3.bf16.msra.mxu0 %v4201_v33 }
 0x21f   :  { %4059 = vmatpush3.bf16.msra.mxu1 %v4203_v56 }
 0x220   :  { %3517 = vmatmul.mubr.bf16.vlgmr.msra.gmra.mrb[28].mxu0 %v2216_v11 }
 0x222   :  { %3557 = vmatmul.mubr.bf16.vlgmr.msra.gmra.mrb[28].mxu1 %v2218_v41 }
 0x293   :  { %v3906_v51 = vpop.f32.mrb[16].mxu0 }
 0x294   :  { %v3907_v4 = vpop.f32.mrb[17].mxu0 }
 0x295   :  { %v3908_v40 = vadd.f32 %v3907_v4, %v3906_v51  ;;  %v3909_v22 = vpop.f32.mrb[18].mxu0  ;;  %v3928_v31 = vpop.f32.mrb[16].mxu1 }
 0x296   :  { %v3910_v18 = vpop.f32.mrb[19].mxu0  ;;  %v3929_v62 = vpop.f32.mrb[17].mxu1 }
 0x297   :  { %v3930_v43 = vadd.f32 %v3929_v62, %v3928_v31  ;;  %v3931_v39 = vpop.f32.mrb[18].mxu1 }
 0x298   :  { %v3932_v47 = vpop.f32.mrb[19].mxu1 }
 0x299   :  { %v3319_v48 = vadd.f32 %v3930_v43, %v3908_v40 }
 0x2b3   :  { %v3950_v8 = vpop.f32.mrb[20].mxu0 }
 0x2b4   :  { %v3951_v12 = vpop.f32.mrb[21].mxu0 }
 0x2b5   :  { %v3952_v20 = vadd.f32 %v3951_v12, %v3950_v8  ;;  %v3953_v36 = vpop.f32.mrb[22].mxu0  ;;  %v3972_v60 = vpop.f32.mrb[20].mxu1 }
 0x2b6   :  { %v3954_v46 = vpop.f32.mrb[23].mxu0  ;;  %v3973_v0 = vpop.f32.mrb[21].mxu1 }
 0x2b7   :  { %v3359_v58 = vadd.f32 %v3952_v20, %v3319_v48  ;;  %v3974_v5 = vadd.f32 %v3973_v0, %v3972_v60  ;;  %v3975_v54 = vpop.f32.mrb[22].mxu1 }
 0x2b8   :  { %v3976_v2 = vpop.f32.mrb[23].mxu1 }
 0x2b9   :  { %v3399_v16 = vadd.f32 %v3974_v5, %v3359_v58 }
 0x2d3   :  { %v3994_v14 = vpop.f32.mrb[24].mxu0 }
 0x2d4   :  { %v3995_v59 = vpop.f32.mrb[25].mxu0 }
 0x2d5   :  { %v3996_v61 = vadd.f32 %v3995_v59, %v3994_v14  ;;  %v3997_v26 = vpop.f32.mrb[26].mxu0  ;;  %v4016_v44 = vpop.f32.mrb[24].mxu1 }
 0x2d6   :  { %v3998_v55 = vpop.f32.mrb[27].mxu0  ;;  %v4017_v45 = vpop.f32.mrb[25].mxu1 }
 0x2d7   :  { %v3439_v6 = vadd.f32 %v3996_v61, %v3399_v16  ;;  %v4018_v49 = vadd.f32 %v4017_v45, %v4016_v44  ;;  %v4019_v27 = vpop.f32.mrb[26].mxu1 }
 0x2d8   :  { %v4020_v32 = vpop.f32.mrb[27].mxu1 }
 0x2d9   :  { %v3479_v38 = vadd.f32 %v4018_v49, %v3439_v6 }
 0x2f3   :  { %v4038_v10 = vpop.f32.mrb[28].mxu0 }
 0x2f4   :  { %v4039_v19 = vpop.f32.mrb[29].mxu0 }
 0x2f5   :  { %v4040_v52 = vadd.f32 %v4039_v19, %v4038_v10  ;;  %v4041_v30 = vpop.f32.mrb[30].mxu0  ;;  %v4060_v3 = vpop.f32.mrb[28].mxu1 }
 0x2f6   :  { %v4042_v34 = vpop.f32.mrb[31].mxu0  ;;  %v4061_v37 = vpop.f32.mrb[29].mxu1 }
 0x2f7   :  { %v3519_v53 = vadd.f32 %v4040_v52, %v3479_v38  ;;  %v4062_v15 = vadd.f32 %v4061_v37, %v4060_v3  ;;  %v4063_v35 = vpop.f32.mrb[30].mxu1 }
 0x2f8   :  { %v4064_v13 = vpop.f32.mrb[31].mxu1 }
 0x2f9   :  { %v3559_v29 = vadd.f32 %v4062_v15, %v3519_v53 }
 0x2fb   :  { %3564 = vst [vmem:[#allocation6] sm:$0x3] %v3559_v29 }
 0x2fc   :  { %4269 = shalt.err (!%p4266_p12)
}
 0x2fd   :  { %s4270_s11 = scalar_lea.hbm %s5348_s4, 32 }
 0x2fe   :  { %p4271_p13 = scmp.ne.s32.totalorder %s5348_s4, %s4270_s11  ;;  %p4274_p0 = scmp.lt.u32.totalorder %s4270_s11, %s5348_s4 }
 0x300   :  { %p4276_p1 = pnand %p4274_p0, %p4271_p13 }
 0x302   :  { %4279 = shalt.err (!%p4276_p1)
}
 0x303   :  { %3574 = dma.vmem_to_hbm [thread:$0]  %s3572_s7, 32, %s5348_s4, [#allocation5]  }
 0x304   :  { %4282 = dma.done.wait [#allocation5], 32  }
 0x305   :  { %4283 = vsyncadd [#allocation5], 4294967264 }
 0x306   :  { %3578 = vsyncpa [#allocation4], 1 }
 0x307   :  { %3579 = vsyncpa [#allocation5], 1 }

</bundles_post_ra>
